<compile_context>
chip_gen: v6e
topology: v6e:2x2x1
jax: 0.10.0
libtpu: 0.0.40
codegen_flags: <defaults>
</compile_context>

<pallas_src>
import functools

import jax
import jax.numpy as jnp
from jax.experimental import pallas as pl
from jax.experimental.pallas import tpu as pltpu


def _round_up(x, m):
    return ((x + m - 1) // m) * m


def _pick_tile(hw, want):
    """Spatial tile: full extent for small hw (block dim == array dim is always
    legal), otherwise a multiple of 128 -- preferring an exact divisor of hw;
    if none exists, the last partial tile is handled by Pallas's masked
    boundary blocks (per-pixel compute, so garbage padding columns are inert
    and their stores are dropped)."""
    want = max(128, (want // 128) * 128)
    if hw <= want:
        return hw
    for t in range(want, 127, -128):      # prefer an exact divisor (no masked tail)
        if hw % t == 0:
            return t
    return want                            # masked remainder tile


def _default_tile_hw():
    """512 px/step on v5e (already at its MXU floor; bigger tiles only add
    VMEM/vreg pressure), 1024 px/step on v6e/v7x (halves the ~0.35us/step
    grid overhead)."""
    try:
        kind = jax.devices()[0].device_kind.lower()
    except Exception:
        return 1024
    if "v5 lite" in kind or "v5lite" in kind or "v5e" in kind:
        return 512
    return 1024


def ace_head_kernel(x_ref, wA_ref, wS_ref, w3_ref, b_ref, o_ref, *,
                    c_head, n_lm, b_offsets, lane_dense_bias):
    h = c_head

    def bias_col(idx, c_out):
        off = b_offsets[idx]
        if lane_dense_bias:
            # Lane-dense (8, round_up(c_out,128)) segment -> (c_out, 1) column
            # via a natively-tiled XLU transpose (values replicated on sublanes,
            # segment offsets are multiples of 128).
            width = _round_up(c_out, 128)
            seg = b_ref[:, off:off + width]
            return jnp.transpose(seg)[:c_out, 0:1]
        return b_ref[off:off + c_out, :]          # (c_out, 1) column slab

    x = x_ref[...]                                # (C_in, T) bf16, no in-kernel cast

    # Fused block1.conv1 + downsample: one pass over the wide K = C_in operand.
    t = jnp.dot(wA_ref[...], x, preferred_element_type=jnp.float32)
    t = t + bias_col(0, 2 * h)
    r = jax.nn.relu(t[:h, :])                     # relu(block1.conv1(x))
    ds = t[h:, :]                                 # downsample(x)

    def layer(k, a, act):
        w = wS_ref[k * h:(k + 1) * h, :]          # static row slice of the slab
        y = jnp.dot(w, a.astype(w.dtype), preferred_element_type=jnp.float32)
        y = y + bias_col(1 + k, h)
        return jax.nn.relu(y) if act else y

    r = layer(0, r, True)                         # block1.conv2
    r = layer(1, r, True)                         # block1.conv3
    x1 = ds + r                                   # downsample(x) + res

    r = layer(2, x1, True)                        # block2.conv1
    r = layer(3, r, True)                         # block2.conv2
    r = layer(4, r, True)                         # block2.conv3
    x2 = x1 + r                                   # Identity(x) + res

    r = layer(5, x2, False)                       # fc1 (no activation)
    r = layer(6, r, False)                        # fc2
    y = jnp.dot(w3_ref[...], r.astype(w3_ref.dtype),
                preferred_element_type=jnp.float32)
    y = y + bias_col(8, n_lm)                     # fc3
    o_ref[...] = y.astype(o_ref.dtype)


def ace_head_pallas(x_nchw, params, *, tile_hw=None,
                    compute_dtype=jnp.bfloat16, conservative=False):
    """x_nchw: (N, C_in, H, W) -> (N, num_landmarks, H, W) float32.

    params: PyTorch-layout weights -- conv weight (C_out, C_in) (i.e.
    weight[:, :, 0, 0]) and bias (C_out,).

    conservative=True reverts to the previously-validated layout
    (double-buffered params, (C, 1) bias columns) for older jax versions.
    """
    n, c_in, height, width = x_nchw.shape
    hw = height * width
    c_head = params["w12"].shape[0]
    n_lm = params["wf3"].shape[0]

    if tile_hw is None:
        tile_hw = _default_tile_hw()
    tile = _pick_tile(hw, tile_hw)
    n_tiles = pl.cdiv(hw, tile)

    # bf16 input, channels-by-pixels (the NCHW reshape is free).
    x = x_nchw.reshape(n, c_in, hw).astype(compute_dtype)

    # Weight slabs (bf16).
    wA = jnp.concatenate([params["w11"], params["wd"]], axis=0).astype(compute_dtype)
    w_keys = ("w12", "w13", "w21", "w22", "w23", "wf1", "wf2")
    wS = jnp.concatenate([params[k] for k in w_keys], axis=0).astype(compute_dtype)
    w3 = params["wf3"].astype(compute_dtype)      # natural n_lm rows, no padding

    # Bias slab (f32). Segment order: [conv1|downsample], 7 head layers, fc3.
    c_outs = [2 * c_head] + [c_head] * 7 + [n_lm]
    b_vals = ([jnp.concatenate([params["b11"], params["bd"]])]
              + [params[k] for k in ("b12", "b13", "b21", "b22", "b23",
                                     "bf1", "bf2", "bf3")])
    if not conservative:
        widths = [_round_up(c, 128) for c in c_outs]
        offs = tuple(int(sum(widths[:i])) for i in range(len(widths)))
        slab = jnp.zeros((8, sum(widths)), jnp.float32)
        for off, c, v in zip(offs, c_outs, b_vals):
            slab = slab.at[:, off:off + c].set(
                jnp.broadcast_to(v.astype(jnp.float32)[None, :], (8, c)))
        b_arr = slab                              # lane-dense, ~KBs of VMEM
    else:
        offs = tuple(int(sum(c_outs[:i])) for i in range(len(c_outs)))
        b_arr = jnp.concatenate([v.astype(jnp.float32) for v in b_vals]).reshape(-1, 1)

    param_arrays = [wA, wS, w3, b_arr]

    def const_spec(p):
        # Grid-invariant blocks: single-buffer them so the weight slabs are not
        # duplicated in VMEM (biggest VMEM lever on v7x).
        if not conservative:
            return pl.BlockSpec(p.shape, lambda i, j: (0, 0),
                                pipeline_mode=pl.Buffered(1))
        return pl.BlockSpec(p.shape, lambda i, j: (0, 0))

    flops = 2 * n * hw * (2 * c_head * c_in + 7 * c_head * c_head + n_lm * c_head)
    bytes_accessed = (sum(int(p.size) * p.dtype.itemsize for p in [x] + param_arrays)
                      + n * n_lm * hw * 4)

    out = pl.pallas_call(
        functools.partial(ace_head_kernel, c_head=c_head, n_lm=n_lm,
                          b_offsets=offs, lane_dense_bias=not conservative),
        out_shape=jax.ShapeDtypeStruct((n, n_lm, hw), jnp.float32),
        grid_spec=pltpu.PrefetchScalarGridSpec(
            num_scalar_prefetch=0,
            grid=(n, n_tiles),
            in_specs=[pl.BlockSpec((None, c_in, tile), lambda i, j: (i, 0, j))]
                     + [const_spec(p) for p in param_arrays],
            out_specs=pl.BlockSpec((None, n_lm, tile), lambda i, j: (i, 0, j)),
        ),
        # TODO(synk): on v7x, if ("parallel","parallel") does not shard the
        # spatial axis across the two TensorCores at N=1, switch that axis to
        # pltpu.CORE_PARALLEL (or an explicit core_map split).
        compiler_params=pltpu.CompilerParams(
            dimension_semantics=("parallel", "parallel"),
            vmem_limit_bytes=56 * 1024 * 1024,    # tile=1024 fits with headroom on v7x
        ),
        cost_estimate=pl.CostEstimate(flops=flops, transcendentals=0,
                                      bytes_accessed=bytes_accessed),
    )(x, *param_arrays)

    return out.reshape(n, n_lm, height, width)


def init_params(key, c_in, c_head, n_lm):
    """Deterministic synthetic parameters in PyTorch layout:
    weight (C_out, C_in) == Conv2d.weight[:, :, 0, 0], bias (C_out,)."""
    def conv(k, ci, co):
        kw, kb = jax.random.split(k)
        w = jax.random.normal(kw, (co, ci), jnp.float32) * (1.0 / jnp.sqrt(ci))
        b = jax.random.normal(kb, (co,), jnp.float32) * 0.05
        return w, b

    keys = jax.random.split(key, 10)
    p = {}
    p["w11"], p["b11"] = conv(keys[0], c_in, c_head)
    p["w12"], p["b12"] = conv(keys[1], c_head, c_head)
    p["w13"], p["b13"] = conv(keys[2], c_head, c_head)
    p["wd"],  p["bd"]  = conv(keys[3], c_in, c_head)
    p["w21"], p["b21"] = conv(keys[4], c_head, c_head)
    p["w22"], p["b22"] = conv(keys[5], c_head, c_head)
    p["w23"], p["b23"] = conv(keys[6], c_head, c_head)
    p["wf1"], p["bf1"] = conv(keys[7], c_head, c_head)
    p["wf2"], p["bf2"] = conv(keys[8], c_head, c_head)
    p["wf3"], p["bf3"] = conv(keys[9], c_head, n_lm)
    return p


def ace_head_ref(x_nchw, params, compute_dtype=jnp.bfloat16):
    """Pure-JAX reference mirroring the kernel's precision path
    (bf16 matmul operands, f32 accumulation, f32 bias/relu/residual)."""
    n, c, h, w = x_nchw.shape

    def conv(a, wk, bk, act):
        w_ = params[wk].astype(compute_dtype)
        b_ = params[bk].astype(jnp.float32)
        y = jnp.einsum("oc,nci->noi", w_, a.astype(compute_dtype),
                       preferred_element_type=jnp.float32)
        y = y + b_[None, :, None]
        return jax.nn.relu(y) if act else y

    x = x_nchw.reshape(n, c, h * w)
    r = conv(x, "w11", "b11", True)
    r = conv(r, "w12", "b12", True)
    r = conv(r, "w13", "b13", True)
    x1 = conv(x, "wd", "bd", False) + r
    r = conv(x1, "w21", "b21", True)
    r = conv(r, "w22", "b22", True)
    r = conv(r, "w23", "b23", True)
    x2 = x1 + r
    r = conv(x2, "wf1", "bf1", False)
    r = conv(r, "wf2", "bf2", False)
    r = conv(r, "wf3", "bf3", False)
    return r.reshape(n, -1, h, w)


if __name__ == "__main__":
    # Small shapes consistent with the module (original: C_in=2048, head=512,
    # L=200; scaled down here).  N_LM=20 exercises a non-multiple-of-8 output
    # channel count; H*W=64 exercises the full-extent spatial tile path.
    N, C_IN, H, W = 2, 64, 8, 8
    C_HEAD, N_LM = 32, 20

    key = jax.random.PRNGKey(0)
    kx, kp = jax.random.split(key)
    x = jax.random.normal(kx, (N, C_IN, H, W), jnp.float32)
    params = init_params(kp, C_IN, C_HEAD, N_LM)

    ref = ace_head_ref(x, params)

    # Primary config: single-buffered params + lane-dense bias slab.  If the
    # installed jax lacks pipeline_mode=Buffered / the in-kernel transpose
    # path, fall back once to the previously-validated conservative layout.
    out, last_err = None, None
    for conservative in (False, True):
        try:
            run = jax.jit(functools.partial(ace_head_pallas,
                                            conservative=conservative))
            out = run(x, params)
            jax.block_until_ready(out)
            break
        except Exception as e:
            last_err = e
            out = None
    if out is None:
        raise last_err

    assert out.shape == (N, N_LM, H, W), out.shape
    max_err = float(jnp.max(jnp.abs(out - ref)))
    # Note: bf16-operand rounding error grows with K; at real C_in=2048 a
    # relative tolerance of ~1e-2 would be appropriate.
    assert jnp.allclose(out, ref, atol=2e-3, rtol=2e-3), max_err
    print("KERNEL_OK")
</pallas_src>

<mosaic_0001>
module attributes {stable_mosaic.version = 11 : i64} {
  func.func @ace_head_kernel(%arg0: i32, %arg1: i32, %arg2: memref<1x64x64xbf16, #tpu.memory_space<vmem>>, %arg3: memref<64x64xbf16, #tpu.memory_space<vmem>>, %arg4: memref<224x32xbf16, #tpu.memory_space<vmem>>, %arg5: memref<20x32xbf16, #tpu.memory_space<vmem>>, %arg6: memref<8x1152xf32, #tpu.memory_space<vmem>>, %arg7: memref<1x20x64xf32, #tpu.memory_space<vmem>>) attributes {dimension_semantics = [#tpu.dimension_semantics<parallel>, #tpu.dimension_semantics<parallel>], iteration_bounds = array<i64: 2, 1>, scalar_prefetch = 0 : i64, scratch_operands = 0 : i64, tpu.core_type = #tpu.core_type<tc>, window_params = [{transform_indices = @transform_0, window_bounds = array<i64: 1, 64, 64>}, {pipeline_mode = #tpu.pipeline_mode<synchronous>, transform_indices = @transform_1, window_bounds = array<i64: 64, 64>}, {pipeline_mode = #tpu.pipeline_mode<synchronous>, transform_indices = @transform_2, window_bounds = array<i64: 224, 32>}, {pipeline_mode = #tpu.pipeline_mode<synchronous>, transform_indices = @transform_3, window_bounds = array<i64: 20, 32>}, {pipeline_mode = #tpu.pipeline_mode<synchronous>, transform_indices = @transform_4, window_bounds = array<i64: 8, 1152>}, {transform_indices = @transform_5, window_bounds = array<i64: 1, 20, 64>}]} {
    %c0 = arith.constant 0 : index
    %c0_0 = arith.constant 0 : index
    %c0_1 = arith.constant 0 : index
    %0 = vector.load %arg2[%c0, %c0_0, %c0_1] : memref<1x64x64xbf16, #tpu.memory_space<vmem>>, vector<1x64x64xbf16>
    %1 = vector.shape_cast %0 : vector<1x64x64xbf16> to vector<64x64xbf16>
    %c0_2 = arith.constant 0 : index
    %c0_3 = arith.constant 0 : index
    %2 = vector.load %arg3[%c0_2, %c0_3] : memref<64x64xbf16, #tpu.memory_space<vmem>>, vector<64x64xbf16>
    %cst = arith.constant dense<0.000000e+00> : vector<64x64xf32>
    %3 = tpu.matmul %2, %1, %cst {dimension_numbers = #tpu.dot_dimension_numbers<[1], [0], [0], [1], [0, 0, 1, 1], [], []>} : vector<64x64xbf16>, vector<64x64xbf16>, vector<64x64xf32> -> vector<64x64xf32>
    %c0_4 = arith.constant 0 : index
    %c0_5 = arith.constant 0 : index
    %4 = vector.load %arg6[%c0_4, %c0_5] : memref<8x1152xf32, #tpu.memory_space<vmem>>, vector<8x128xf32>
    %5 = tpu.transpose %4, [1, 0] : vector<8x128xf32> -> vector<128x8xf32>
    %6 = vector.extract_strided_slice %5 {offsets = [0, 0], sizes = [64, 1], strides = [1, 1]} : vector<128x8xf32> to vector<64x1xf32>
    %7 = vector.broadcast %6 : vector<64x1xf32> to vector<64x64xf32>
    %8 = arith.addf %3, %7 : vector<64x64xf32>
    %9 = vector.extract_strided_slice %8 {offsets = [0, 0], sizes = [32, 64], strides = [1, 1]} : vector<64x64xf32> to vector<32x64xf32>
    %cst_6 = arith.constant 0.000000e+00 : f32
    %10 = vector.broadcast %cst_6 : f32 to vector<32x64xf32>
    %11 = arith.maximumf %9, %10 : vector<32x64xf32>
    %12 = vector.extract_strided_slice %8 {offsets = [32, 0], sizes = [32, 64], strides = [1, 1]} : vector<64x64xf32> to vector<32x64xf32>
    %c0_7 = arith.constant 0 : index
    %c0_8 = arith.constant 0 : index
    %13 = vector.load %arg4[%c0_7, %c0_8] : memref<224x32xbf16, #tpu.memory_space<vmem>>, vector<32x32xbf16>
    %14 = arith.truncf %11 : vector<32x64xf32> to vector<32x64xbf16>
    %cst_9 = arith.constant dense<0.000000e+00> : vector<32x64xf32>
    %15 = tpu.matmul %13, %14, %cst_9 {dimension_numbers = #tpu.dot_dimension_numbers<[1], [0], [0], [1], [0, 0, 1, 1], [], []>} : vector<32x32xbf16>, vector<32x64xbf16>, vector<32x64xf32> -> vector<32x64xf32>
    %c0_10 = arith.constant 0 : index
    %c128 = arith.constant 128 : index
    %16 = vector.load %arg6[%c0_10, %c128] : memref<8x1152xf32, #tpu.memory_space<vmem>>, vector<8x128xf32>
    %17 = tpu.transpose %16, [1, 0] : vector<8x128xf32> -> vector<128x8xf32>
    %18 = vector.extract_strided_slice %17 {offsets = [0, 0], sizes = [32, 1], strides = [1, 1]} : vector<128x8xf32> to vector<32x1xf32>
    %19 = vector.broadcast %18 : vector<32x1xf32> to vector<32x64xf32>
    %20 = arith.addf %15, %19 : vector<32x64xf32>
    %cst_11 = arith.constant 0.000000e+00 : f32
    %21 = vector.broadcast %cst_11 : f32 to vector<32x64xf32>
    %22 = arith.maximumf %20, %21 : vector<32x64xf32>
    %c32 = arith.constant 32 : index
    %c0_12 = arith.constant 0 : index
    %23 = vector.load %arg4[%c32, %c0_12] : memref<224x32xbf16, #tpu.memory_space<vmem>>, vector<32x32xbf16>
    %24 = arith.truncf %22 : vector<32x64xf32> to vector<32x64xbf16>
    %cst_13 = arith.constant dense<0.000000e+00> : vector<32x64xf32>
    %25 = tpu.matmul %23, %24, %cst_13 {dimension_numbers = #tpu.dot_dimension_numbers<[1], [0], [0], [1], [0, 0, 1, 1], [], []>} : vector<32x32xbf16>, vector<32x64xbf16>, vector<32x64xf32> -> vector<32x64xf32>
    %c0_14 = arith.constant 0 : index
    %c256 = arith.constant 256 : index
    %26 = vector.load %arg6[%c0_14, %c256] : memref<8x1152xf32, #tpu.memory_space<vmem>>, vector<8x128xf32>
    %27 = tpu.transpose %26, [1, 0] : vector<8x128xf32> -> vector<128x8xf32>
    %28 = vector.extract_strided_slice %27 {offsets = [0, 0], sizes = [32, 1], strides = [1, 1]} : vector<128x8xf32> to vector<32x1xf32>
    %29 = vector.broadcast %28 : vector<32x1xf32> to vector<32x64xf32>
    %30 = arith.addf %25, %29 : vector<32x64xf32>
    %cst_15 = arith.constant 0.000000e+00 : f32
    %31 = vector.broadcast %cst_15 : f32 to vector<32x64xf32>
    %32 = arith.maximumf %30, %31 : vector<32x64xf32>
    %33 = arith.addf %12, %32 : vector<32x64xf32>
    %c64 = arith.constant 64 : index
    %c0_16 = arith.constant 0 : index
    %34 = vector.load %arg4[%c64, %c0_16] : memref<224x32xbf16, #tpu.memory_space<vmem>>, vector<32x32xbf16>
    %35 = arith.truncf %33 : vector<32x64xf32> to vector<32x64xbf16>
    %cst_17 = arith.constant dense<0.000000e+00> : vector<32x64xf32>
    %36 = tpu.matmul %34, %35, %cst_17 {dimension_numbers = #tpu.dot_dimension_numbers<[1], [0], [0], [1], [0, 0, 1, 1], [], []>} : vector<32x32xbf16>, vector<32x64xbf16>, vector<32x64xf32> -> vector<32x64xf32>
    %c0_18 = arith.constant 0 : index
    %c384 = arith.constant 384 : index
    %37 = vector.load %arg6[%c0_18, %c384] : memref<8x1152xf32, #tpu.memory_space<vmem>>, vector<8x128xf32>
    %38 = tpu.transpose %37, [1, 0] : vector<8x128xf32> -> vector<128x8xf32>
    %39 = vector.extract_strided_slice %38 {offsets = [0, 0], sizes = [32, 1], strides = [1, 1]} : vector<128x8xf32> to vector<32x1xf32>
    %40 = vector.broadcast %39 : vector<32x1xf32> to vector<32x64xf32>
    %41 = arith.addf %36, %40 : vector<32x64xf32>
    %cst_19 = arith.constant 0.000000e+00 : f32
    %42 = vector.broadcast %cst_19 : f32 to vector<32x64xf32>
    %43 = arith.maximumf %41, %42 : vector<32x64xf32>
    %c96 = arith.constant 96 : index
    %c0_20 = arith.constant 0 : index
    %44 = vector.load %arg4[%c96, %c0_20] : memref<224x32xbf16, #tpu.memory_space<vmem>>, vector<32x32xbf16>
    %45 = arith.truncf %43 : vector<32x64xf32> to vector<32x64xbf16>
    %cst_21 = arith.constant dense<0.000000e+00> : vector<32x64xf32>
    %46 = tpu.matmul %44, %45, %cst_21 {dimension_numbers = #tpu.dot_dimension_numbers<[1], [0], [0], [1], [0, 0, 1, 1], [], []>} : vector<32x32xbf16>, vector<32x64xbf16>, vector<32x64xf32> -> vector<32x64xf32>
    %c0_22 = arith.constant 0 : index
    %c512 = arith.constant 512 : index
    %47 = vector.load %arg6[%c0_22, %c512] : memref<8x1152xf32, #tpu.memory_space<vmem>>, vector<8x128xf32>
    %48 = tpu.transpose %47, [1, 0] : vector<8x128xf32> -> vector<128x8xf32>
    %49 = vector.extract_strided_slice %48 {offsets = [0, 0], sizes = [32, 1], strides = [1, 1]} : vector<128x8xf32> to vector<32x1xf32>
    %50 = vector.broadcast %49 : vector<32x1xf32> to vector<32x64xf32>
    %51 = arith.addf %46, %50 : vector<32x64xf32>
    %cst_23 = arith.constant 0.000000e+00 : f32
    %52 = vector.broadcast %cst_23 : f32 to vector<32x64xf32>
    %53 = arith.maximumf %51, %52 : vector<32x64xf32>
    %c128_24 = arith.constant 128 : index
    %c0_25 = arith.constant 0 : index
    %54 = vector.load %arg4[%c128_24, %c0_25] : memref<224x32xbf16, #tpu.memory_space<vmem>>, vector<32x32xbf16>
    %55 = arith.truncf %53 : vector<32x64xf32> to vector<32x64xbf16>
    %cst_26 = arith.constant dense<0.000000e+00> : vector<32x64xf32>
    %56 = tpu.matmul %54, %55, %cst_26 {dimension_numbers = #tpu.dot_dimension_numbers<[1], [0], [0], [1], [0, 0, 1, 1], [], []>} : vector<32x32xbf16>, vector<32x64xbf16>, vector<32x64xf32> -> vector<32x64xf32>
    %c0_27 = arith.constant 0 : index
    %c640 = arith.constant 640 : index
    %57 = vector.load %arg6[%c0_27, %c640] : memref<8x1152xf32, #tpu.memory_space<vmem>>, vector<8x128xf32>
    %58 = tpu.transpose %57, [1, 0] : vector<8x128xf32> -> vector<128x8xf32>
    %59 = vector.extract_strided_slice %58 {offsets = [0, 0], sizes = [32, 1], strides = [1, 1]} : vector<128x8xf32> to vector<32x1xf32>
    %60 = vector.broadcast %59 : vector<32x1xf32> to vector<32x64xf32>
    %61 = arith.addf %56, %60 : vector<32x64xf32>
    %cst_28 = arith.constant 0.000000e+00 : f32
    %62 = vector.broadcast %cst_28 : f32 to vector<32x64xf32>
    %63 = arith.maximumf %61, %62 : vector<32x64xf32>
    %64 = arith.addf %33, %63 : vector<32x64xf32>
    %c160 = arith.constant 160 : index
    %c0_29 = arith.constant 0 : index
    %65 = vector.load %arg4[%c160, %c0_29] : memref<224x32xbf16, #tpu.memory_space<vmem>>, vector<32x32xbf16>
    %66 = arith.truncf %64 : vector<32x64xf32> to vector<32x64xbf16>
    %cst_30 = arith.constant dense<0.000000e+00> : vector<32x64xf32>
    %67 = tpu.matmul %65, %66, %cst_30 {dimension_numbers = #tpu.dot_dimension_numbers<[1], [0], [0], [1], [0, 0, 1, 1], [], []>} : vector<32x32xbf16>, vector<32x64xbf16>, vector<32x64xf32> -> vector<32x64xf32>
    %c0_31 = arith.constant 0 : index
    %c768 = arith.constant 768 : index
    %68 = vector.load %arg6[%c0_31, %c768] : memref<8x1152xf32, #tpu.memory_space<vmem>>, vector<8x128xf32>
    %69 = tpu.transpose %68, [1, 0] : vector<8x128xf32> -> vector<128x8xf32>
    %70 = vector.extract_strided_slice %69 {offsets = [0, 0], sizes = [32, 1], strides = [1, 1]} : vector<128x8xf32> to vector<32x1xf32>
    %71 = vector.broadcast %70 : vector<32x1xf32> to vector<32x64xf32>
    %72 = arith.addf %67, %71 : vector<32x64xf32>
    %c192 = arith.constant 192 : index
    %c0_32 = arith.constant 0 : index
    %73 = vector.load %arg4[%c192, %c0_32] : memref<224x32xbf16, #tpu.memory_space<vmem>>, vector<32x32xbf16>
    %74 = arith.truncf %72 : vector<32x64xf32> to vector<32x64xbf16>
    %cst_33 = arith.constant dense<0.000000e+00> : vector<32x64xf32>
    %75 = tpu.matmul %73, %74, %cst_33 {dimension_numbers = #tpu.dot_dimension_numbers<[1], [0], [0], [1], [0, 0, 1, 1], [], []>} : vector<32x32xbf16>, vector<32x64xbf16>, vector<32x64xf32> -> vector<32x64xf32>
    %c0_34 = arith.constant 0 : index
    %c896 = arith.constant 896 : index
    %76 = vector.load %arg6[%c0_34, %c896] : memref<8x1152xf32, #tpu.memory_space<vmem>>, vector<8x128xf32>
    %77 = tpu.transpose %76, [1, 0] : vector<8x128xf32> -> vector<128x8xf32>
    %78 = vector.extract_strided_slice %77 {offsets = [0, 0], sizes = [32, 1], strides = [1, 1]} : vector<128x8xf32> to vector<32x1xf32>
    %79 = vector.broadcast %78 : vector<32x1xf32> to vector<32x64xf32>
    %80 = arith.addf %75, %79 : vector<32x64xf32>
    %c0_35 = arith.constant 0 : index
    %c0_36 = arith.constant 0 : index
    %81 = vector.load %arg5[%c0_35, %c0_36] : memref<20x32xbf16, #tpu.memory_space<vmem>>, vector<20x32xbf16>
    %82 = arith.truncf %80 : vector<32x64xf32> to vector<32x64xbf16>
    %cst_37 = arith.constant dense<0.000000e+00> : vector<20x64xf32>
    %83 = tpu.matmul %81, %82, %cst_37 {dimension_numbers = #tpu.dot_dimension_numbers<[1], [0], [0], [1], [0, 0, 1, 1], [], []>} : vector<20x32xbf16>, vector<32x64xbf16>, vector<20x64xf32> -> vector<20x64xf32>
    %c0_38 = arith.constant 0 : index
    %c1024 = arith.constant 1024 : index
    %84 = vector.load %arg6[%c0_38, %c1024] : memref<8x1152xf32, #tpu.memory_space<vmem>>, vector<8x128xf32>
    %85 = tpu.transpose %84, [1, 0] : vector<8x128xf32> -> vector<128x8xf32>
    %86 = vector.extract_strided_slice %85 {offsets = [0, 0], sizes = [20, 1], strides = [1, 1]} : vector<128x8xf32> to vector<20x1xf32>
    %87 = vector.broadcast %86 : vector<20x1xf32> to vector<20x64xf32>
    %88 = arith.addf %83, %87 : vector<20x64xf32>
    %c0_39 = arith.constant 0 : index
    %c0_40 = arith.constant 0 : index
    %c0_41 = arith.constant 0 : index
    %89 = vector.load %arg7[%c0_39, %c0_40, %c0_41] : memref<1x20x64xf32, #tpu.memory_space<vmem>>, vector<1x20x64xf32>
    %90 = vector.shape_cast %89 : vector<1x20x64xf32> to vector<20x64xf32>
    %91 = vector.shape_cast %88 : vector<20x64xf32> to vector<1x20x64xf32>
    tpu.vector_store %arg7[%c0_39, %c0_40, %c0_41], %91 {strides = array<i32>} : memref<1x20x64xf32, #tpu.memory_space<vmem>>, vector<1x20x64xf32>,
    return
  }
  func.func @transform_0(%arg0: i32, %arg1: i32) -> (i32, i32, i32) {
    %c0_i32 = arith.constant 0 : i32
    %c0_i32_0 = arith.constant 0 : i32
    return %arg0, %c0_i32, %arg1 : i32, i32, i32
  }
  func.func @transform_1(%arg0: i32, %arg1: i32) -> (i32, i32) {
    %c0_i32 = arith.constant 0 : i32
    %c0_i32_0 = arith.constant 0 : i32
    %c0_i32_1 = arith.constant 0 : i32
    return %c0_i32, %c0_i32_0 : i32, i32
  }
  func.func @transform_2(%arg0: i32, %arg1: i32) -> (i32, i32) {
    %c0_i32 = arith.constant 0 : i32
    %c0_i32_0 = arith.constant 0 : i32
    %c0_i32_1 = arith.constant 0 : i32
    return %c0_i32, %c0_i32_0 : i32, i32
  }
  func.func @transform_3(%arg0: i32, %arg1: i32) -> (i32, i32) {
    %c0_i32 = arith.constant 0 : i32
    %c0_i32_0 = arith.constant 0 : i32
    %c0_i32_1 = arith.constant 0 : i32
    return %c0_i32, %c0_i32_0 : i32, i32
  }
  func.func @transform_4(%arg0: i32, %arg1: i32) -> (i32, i32) {
    %c0_i32 = arith.constant 0 : i32
    %c0_i32_0 = arith.constant 0 : i32
    %c0_i32_1 = arith.constant 0 : i32
    return %c0_i32, %c0_i32_0 : i32, i32
  }
  func.func @transform_5(%arg0: i32, %arg1: i32) -> (i32, i32, i32) {
    %c0_i32 = arith.constant 0 : i32
    %c0_i32_0 = arith.constant 0 : i32
    return %arg0, %c0_i32, %arg1 : i32, i32, i32
  }
}

module attributes {stable_mosaic.version = 11 : i64} {
  func.func @ace_head_kernel(%arg0: i32, %arg1: i32, %arg2: memref<1x64x64xbf16, #tpu.memory_space<vmem>>, %arg3: memref<64x64xbf16, #tpu.memory_space<vmem>>, %arg4: memref<224x32xbf16, #tpu.memory_space<vmem>>, %arg5: memref<20x32xbf16, #tpu.memory_space<vmem>>, %arg6: memref<308x1xf32, #tpu.memory_space<vmem>>, %arg7: memref<1x20x64xf32, #tpu.memory_space<vmem>>) attributes {dimension_semantics = [#tpu.dimension_semantics<parallel>, #tpu.dimension_semantics<parallel>], iteration_bounds = array<i64: 2, 1>, scalar_prefetch = 0 : i64, scratch_operands = 0 : i64, tpu.core_type = #tpu.core_type<tc>, window_params = [{transform_indices = @transform_0, window_bounds = array<i64: 1, 64, 64>}, {pipeline_mode = #tpu.pipeline_mode<synchronous>, transform_indices = @transform_1, window_bounds = array<i64: 64, 64>}, {pipeline_mode = #tpu.pipeline_mode<synchronous>, transform_indices = @transform_2, window_bounds = array<i64: 224, 32>}, {pipeline_mode = #tpu.pipeline_mode<synchronous>, transform_indices = @transform_3, window_bounds = array<i64: 20, 32>}, {pipeline_mode = #tpu.pipeline_mode<synchronous>, transform_indices = @transform_4, window_bounds = array<i64: 308, 1>}, {transform_indices = @transform_5, window_bounds = array<i64: 1, 20, 64>}]} {
    %c0 = arith.constant 0 : index
    %c0_0 = arith.constant 0 : index
    %c0_1 = arith.constant 0 : index
    %0 = vector.load %arg2[%c0, %c0_0, %c0_1] : memref<1x64x64xbf16, #tpu.memory_space<vmem>>, vector<1x64x64xbf16>
    %1 = vector.shape_cast %0 : vector<1x64x64xbf16> to vector<64x64xbf16>
    %c0_2 = arith.constant 0 : index
    %c0_3 = arith.constant 0 : index
    %2 = vector.load %arg3[%c0_2, %c0_3] : memref<64x64xbf16, #tpu.memory_space<vmem>>, vector<64x64xbf16>
    %cst = arith.constant dense<0.000000e+00> : vector<64x64xf32>
    %3 = tpu.matmul %2, %1, %cst {dimension_numbers = #tpu.dot_dimension_numbers<[1], [0], [0], [1], [0, 0, 1, 1], [], []>} : vector<64x64xbf16>, vector<64x64xbf16>, vector<64x64xf32> -> vector<64x64xf32>
    %c0_4 = arith.constant 0 : index
    %c0_5 = arith.constant 0 : index
    %4 = vector.load %arg6[%c0_4, %c0_5] : memref<308x1xf32, #tpu.memory_space<vmem>>, vector<64x1xf32>
    %5 = vector.broadcast %4 : vector<64x1xf32> to vector<64x64xf32>
    %6 = arith.addf %3, %5 : vector<64x64xf32>
    %7 = vector.extract_strided_slice %6 {offsets = [0, 0], sizes = [32, 64], strides = [1, 1]} : vector<64x64xf32> to vector<32x64xf32>
    %cst_6 = arith.constant 0.000000e+00 : f32
    %8 = vector.broadcast %cst_6 : f32 to vector<32x64xf32>
    %9 = arith.maximumf %7, %8 : vector<32x64xf32>
    %10 = vector.extract_strided_slice %6 {offsets = [32, 0], sizes = [32, 64], strides = [1, 1]} : vector<64x64xf32> to vector<32x64xf32>
    %c0_7 = arith.constant 0 : index
    %c0_8 = arith.constant 0 : index
    %11 = vector.load %arg4[%c0_7, %c0_8] : memref<224x32xbf16, #tpu.memory_space<vmem>>, vector<32x32xbf16>
    %12 = arith.truncf %9 : vector<32x64xf32> to vector<32x64xbf16>
    %cst_9 = arith.constant dense<0.000000e+00> : vector<32x64xf32>
    %13 = tpu.matmul %11, %12, %cst_9 {dimension_numbers = #tpu.dot_dimension_numbers<[1], [0], [0], [1], [0, 0, 1, 1], [], []>} : vector<32x32xbf16>, vector<32x64xbf16>, vector<32x64xf32> -> vector<32x64xf32>
    %c64 = arith.constant 64 : index
    %c0_10 = arith.constant 0 : index
    %14 = vector.load %arg6[%c64, %c0_10] : memref<308x1xf32, #tpu.memory_space<vmem>>, vector<32x1xf32>
    %15 = vector.broadcast %14 : vector<32x1xf32> to vector<32x64xf32>
    %16 = arith.addf %13, %15 : vector<32x64xf32>
    %cst_11 = arith.constant 0.000000e+00 : f32
    %17 = vector.broadcast %cst_11 : f32 to vector<32x64xf32>
    %18 = arith.maximumf %16, %17 : vector<32x64xf32>
    %c32 = arith.constant 32 : index
    %c0_12 = arith.constant 0 : index
    %19 = vector.load %arg4[%c32, %c0_12] : memref<224x32xbf16, #tpu.memory_space<vmem>>, vector<32x32xbf16>
    %20 = arith.truncf %18 : vector<32x64xf32> to vector<32x64xbf16>
    %cst_13 = arith.constant dense<0.000000e+00> : vector<32x64xf32>
    %21 = tpu.matmul %19, %20, %cst_13 {dimension_numbers = #tpu.dot_dimension_numbers<[1], [0], [0], [1], [0, 0, 1, 1], [], []>} : vector<32x32xbf16>, vector<32x64xbf16>, vector<32x64xf32> -> vector<32x64xf32>
    %c96 = arith.constant 96 : index
    %c0_14 = arith.constant 0 : index
    %22 = vector.load %arg6[%c96, %c0_14] : memref<308x1xf32, #tpu.memory_space<vmem>>, vector<32x1xf32>
    %23 = vector.broadcast %22 : vector<32x1xf32> to vector<32x64xf32>
    %24 = arith.addf %21, %23 : vector<32x64xf32>
    %cst_15 = arith.constant 0.000000e+00 : f32
    %25 = vector.broadcast %cst_15 : f32 to vector<32x64xf32>
    %26 = arith.maximumf %24, %25 : vector<32x64xf32>
    %27 = arith.addf %10, %26 : vector<32x64xf32>
    %c64_16 = arith.constant 64 : index
    %c0_17 = arith.constant 0 : index
    %28 = vector.load %arg4[%c64_16, %c0_17] : memref<224x32xbf16, #tpu.memory_space<vmem>>, vector<32x32xbf16>
    %29 = arith.truncf %27 : vector<32x64xf32> to vector<32x64xbf16>
    %cst_18 = arith.constant dense<0.000000e+00> : vector<32x64xf32>
    %30 = tpu.matmul %28, %29, %cst_18 {dimension_numbers = #tpu.dot_dimension_numbers<[1], [0], [0], [1], [0, 0, 1, 1], [], []>} : vector<32x32xbf16>, vector<32x64xbf16>, vector<32x64xf32> -> vector<32x64xf32>
    %c128 = arith.constant 128 : index
    %c0_19 = arith.constant 0 : index
    %31 = vector.load %arg6[%c128, %c0_19] : memref<308x1xf32, #tpu.memory_space<vmem>>, vector<32x1xf32>
    %32 = vector.broadcast %31 : vector<32x1xf32> to vector<32x64xf32>
    %33 = arith.addf %30, %32 : vector<32x64xf32>
    %cst_20 = arith.constant 0.000000e+00 : f32
    %34 = vector.broadcast %cst_20 : f32 to vector<32x64xf32>
    %35 = arith.maximumf %33, %34 : vector<32x64xf32>
    %c96_21 = arith.constant 96 : index
    %c0_22 = arith.constant 0 : index
    %36 = vector.load %arg4[%c96_21, %c0_22] : memref<224x32xbf16, #tpu.memory_space<vmem>>, vector<32x32xbf16>
    %37 = arith.truncf %35 : vector<32x64xf32> to vector<32x64xbf16>
    %cst_23 = arith.constant dense<0.000000e+00> : vector<32x64xf32>
    %38 = tpu.matmul %36, %37, %cst_23 {dimension_numbers = #tpu.dot_dimension_numbers<[1], [0], [0], [1], [0, 0, 1, 1], [], []>} : vector<32x32xbf16>, vector<32x64xbf16>, vector<32x64xf32> -> vector<32x64xf32>
    %c160 = arith.constant 160 : index
    %c0_24 = arith.constant 0 : index
    %39 = vector.load %arg6[%c160, %c0_24] : memref<308x1xf32, #tpu.memory_space<vmem>>, vector<32x1xf32>
    %40 = vector.broadcast %39 : vector<32x1xf32> to vector<32x64xf32>
    %41 = arith.addf %38, %40 : vector<32x64xf32>
    %cst_25 = arith.constant 0.000000e+00 : f32
    %42 = vector.broadcast %cst_25 : f32 to vector<32x64xf32>
    %43 = arith.maximumf %41, %42 : vector<32x64xf32>
    %c128_26 = arith.constant 128 : index
    %c0_27 = arith.constant 0 : index
    %44 = vector.load %arg4[%c128_26, %c0_27] : memref<224x32xbf16, #tpu.memory_space<vmem>>, vector<32x32xbf16>
    %45 = arith.truncf %43 : vector<32x64xf32> to vector<32x64xbf16>
    %cst_28 = arith.constant dense<0.000000e+00> : vector<32x64xf32>
    %46 = tpu.matmul %44, %45, %cst_28 {dimension_numbers = #tpu.dot_dimension_numbers<[1], [0], [0], [1], [0, 0, 1, 1], [], []>} : vector<32x32xbf16>, vector<32x64xbf16>, vector<32x64xf32> -> vector<32x64xf32>
    %c192 = arith.constant 192 : index
    %c0_29 = arith.constant 0 : index
    %47 = vector.load %arg6[%c192, %c0_29] : memref<308x1xf32, #tpu.memory_space<vmem>>, vector<32x1xf32>
    %48 = vector.broadcast %47 : vector<32x1xf32> to vector<32x64xf32>
    %49 = arith.addf %46, %48 : vector<32x64xf32>
    %cst_30 = arith.constant 0.000000e+00 : f32
    %50 = vector.broadcast %cst_30 : f32 to vector<32x64xf32>
    %51 = arith.maximumf %49, %50 : vector<32x64xf32>
    %52 = arith.addf %27, %51 : vector<32x64xf32>
    %c160_31 = arith.constant 160 : index
    %c0_32 = arith.constant 0 : index
    %53 = vector.load %arg4[%c160_31, %c0_32] : memref<224x32xbf16, #tpu.memory_space<vmem>>, vector<32x32xbf16>
    %54 = arith.truncf %52 : vector<32x64xf32> to vector<32x64xbf16>
    %cst_33 = arith.constant dense<0.000000e+00> : vector<32x64xf32>
    %55 = tpu.matmul %53, %54, %cst_33 {dimension_numbers = #tpu.dot_dimension_numbers<[1], [0], [0], [1], [0, 0, 1, 1], [], []>} : vector<32x32xbf16>, vector<32x64xbf16>, vector<32x64xf32> -> vector<32x64xf32>
    %c224 = arith.constant 224 : index
    %c0_34 = arith.constant 0 : index
    %56 = vector.load %arg6[%c224, %c0_34] : memref<308x1xf32, #tpu.memory_space<vmem>>, vector<32x1xf32>
    %57 = vector.broadcast %56 : vector<32x1xf32> to vector<32x64xf32>
    %58 = arith.addf %55, %57 : vector<32x64xf32>
    %c192_35 = arith.constant 192 : index
    %c0_36 = arith.constant 0 : index
    %59 = vector.load %arg4[%c192_35, %c0_36] : memref<224x32xbf16, #tpu.memory_space<vmem>>, vector<32x32xbf16>
    %60 = arith.truncf %58 : vector<32x64xf32> to vector<32x64xbf16>
    %cst_37 = arith.constant dense<0.000000e+00> : vector<32x64xf32>
    %61 = tpu.matmul %59, %60, %cst_37 {dimension_numbers = #tpu.dot_dimension_numbers<[1], [0], [0], [1], [0, 0, 1, 1], [], []>} : vector<32x32xbf16>, vector<32x64xbf16>, vector<32x64xf32> -> vector<32x64xf32>
    %c256 = arith.constant 256 : index
    %c0_38 = arith.constant 0 : index
    %62 = vector.load %arg6[%c256, %c0_38] : memref<308x1xf32, #tpu.memory_space<vmem>>, vector<32x1xf32>
    %63 = vector.broadcast %62 : vector<32x1xf32> to vector<32x64xf32>
    %64 = arith.addf %61, %63 : vector<32x64xf32>
    %c0_39 = arith.constant 0 : index
    %c0_40 = arith.constant 0 : index
    %65 = vector.load %arg5[%c0_39, %c0_40] : memref<20x32xbf16, #tpu.memory_space<vmem>>, vector<20x32xbf16>
    %66 = arith.truncf %64 : vector<32x64xf32> to vector<32x64xbf16>
    %cst_41 = arith.constant dense<0.000000e+00> : vector<20x64xf32>
    %67 = tpu.matmul %65, %66, %cst_41 {dimension_numbers = #tpu.dot_dimension_numbers<[1], [0], [0], [1], [0, 0, 1, 1], [], []>} : vector<20x32xbf16>, vector<32x64xbf16>, vector<20x64xf32> -> vector<20x64xf32>
    %c288 = arith.constant 288 : index
    %c0_42 = arith.constant 0 : index
    %68 = vector.load %arg6[%c288, %c0_42] : memref<308x1xf32, #tpu.memory_space<vmem>>, vector<20x1xf32>
    %69 = vector.broadcast %68 : vector<20x1xf32> to vector<20x64xf32>
    %70 = arith.addf %67, %69 : vector<20x64xf32>
    %c0_43 = arith.constant 0 : index
    %c0_44 = arith.constant 0 : index
    %c0_45 = arith.constant 0 : index
    %71 = vector.load %arg7[%c0_43, %c0_44, %c0_45] : memref<1x20x64xf32, #tpu.memory_space<vmem>>, vector<1x20x64xf32>
    %72 = vector.shape_cast %71 : vector<1x20x64xf32> to vector<20x64xf32>
    %73 = vector.shape_cast %70 : vector<20x64xf32> to vector<1x20x64xf32>
    tpu.vector_store %arg7[%c0_43, %c0_44, %c0_45], %73 {strides = array<i32>} : memref<1x20x64xf32, #tpu.memory_space<vmem>>, vector<1x20x64xf32>,
    return
  }
  func.func @transform_0(%arg0: i32, %arg1: i32) -> (i32, i32, i32) {
    %c0_i32 = arith.constant 0 : i32
    %c0_i32_0 = arith.constant 0 : i32
    return %arg0, %c0_i32, %arg1 : i32, i32, i32
  }
  func.func @transform_1(%arg0: i32, %arg1: i32) -> (i32, i32) {
    %c0_i32 = arith.constant 0 : i32
    %c0_i32_0 = arith.constant 0 : i32
    %c0_i32_1 = arith.constant 0 : i32
    return %c0_i32, %c0_i32_0 : i32, i32
  }
  func.func @transform_2(%arg0: i32, %arg1: i32) -> (i32, i32) {
    %c0_i32 = arith.constant 0 : i32
    %c0_i32_0 = arith.constant 0 : i32
    %c0_i32_1 = arith.constant 0 : i32
    return %c0_i32, %c0_i32_0 : i32, i32
  }
  func.func @transform_3(%arg0: i32, %arg1: i32) -> (i32, i32) {
    %c0_i32 = arith.constant 0 : i32
    %c0_i32_0 = arith.constant 0 : i32
    %c0_i32_1 = arith.constant 0 : i32
    return %c0_i32, %c0_i32_0 : i32, i32
  }
  func.func @transform_4(%arg0: i32, %arg1: i32) -> (i32, i32) {
    %c0_i32 = arith.constant 0 : i32
    %c0_i32_0 = arith.constant 0 : i32
    %c0_i32_1 = arith.constant 0 : i32
    return %c0_i32, %c0_i32_0 : i32, i32
  }
  func.func @transform_5(%arg0: i32, %arg1: i32) -> (i32, i32, i32) {
    %c0_i32 = arith.constant 0 : i32
    %c0_i32_0 = arith.constant 0 : i32
    return %arg0, %c0_i32, %arg1 : i32, i32, i32
  }
}

</mosaic_0001>

<bundles_post_ra>
// kernel: ace_head_pallas.1
= control target key start
LH: loop header
LB: loop body
LE: loop exit
PB: predicated region body
PF: predicated region fallthrough
CT: control target
= control target key end

     0   :  { %s1854_s18 = smov 0   ;;  %s1856_s19 = smov 0   ;;  %s2028_s0 = inlined_call_operand.vmem [shape: bf16[2,64,64], index: 0, kind: input, shape index: {}]   ;;  %s2029_s1 = inlined_call_operand.vmem [shape: bf16[64,64], index: 1, kind: input, shape index: {}]   ;;  %s2030_s2 = inlined_call_operand.vmem [shape: bf16[224,32], index: 2, kind: input, shape index: {}]   ;;  %s2031_s3 = inlined_call_operand.vmem [shape: bf16[20,32], index: 3, kind: input, shape index: {}]   ;;  %s2032_s4 = inlined_call_operand.vmem [shape: f32[8,1152], index: 4, kind: input, shape index: {}]   ;;  %s2033_s5 = inlined_call_operand.vmem [shape: f32[2,20,64], index: 5, kind: output, shape index: {}]  }
   0x1   :  { %s1858_s20 = smov 0  }
   0x2 LB: > { %s27_s21 = sadd.s32 1, %s1817_s19  ;;  %p1575_p0 = scmp.ge.s32.totalorder %s1821_s20, 1  ;;  %s1821_s20 = sphi %s1858_s20, %s15_s20   ;;  %s1817_s19 = sphi %s1856_s19, %s2035_s19   ;;  %s1813_s18 = sphi %s1854_s18, %s2034_s18  }
   0x3   : > { %p29_p1 = scmp.ge.s32.totalorder %s27_s21, 2  ;;  %p206_p2 = scmp.lt.s32.totalorder %s1821_s20, 3 }
   0x5   : > { %s2037_s21 = smov (%p29_p1, %s27_s21), 0  ;;  %p207_p3 = pnand %p1575_p0, %p206_p2 }
   0x6   : > { %p240_p4 = scmp.lt.s32.totalorder (!%p207_p3), %s1813_s18, 1 }
   0x7   : > { %210 = sbr.rel (%p207_p3) target bundleno = 1967 (0x7af), region = 40 }
   0xc   : > { %v273_v0 = vld [vmem:[%s2032_s4] sm:$0xff]  ;;  %vm390_vm0 = vcmask 523264   ;;  %s2039_s18 = smov (!%p240_p4, %s1813_s18), 1  ;;  %v1823_v2 = vmov 0   ;;  %v1780_v7 = vld [vmem:[%s2029_s1 + $0x8] sm:$0xff]   ;;  %vm541_vm1 = vcmask 261120  }
   0xd   : > { %v1779_v1 = vld [vmem:[%s2029_s1] sm:$0xff]   ;;  %274 = vxpose.xlu0.b32.start.end [1/1] (short) (narrow) %v273_v0, 64  ;;  %1774 = vset.pattern.permute.xlu1 %v1823_v2  ;;  %s1625_s26 = sshll.u32 %s2039_s18, 5  ;;  %v478_v13 = vld [vmem:[%s2032_s4 + $0x8] sm:$0xff]  ;;  %v1783_v14 = vld [vmem:[%s2029_s1 + $0x10] sm:$0xff]   ;;  %s1746_s17 = smul.u32 24, %s2039_s18 }
   0xe   : > { %1674 = vmatprep.mubr.msk.bf16.mxu0 %vm390_vm0, %v1779_v1  ;;  %s247_s29 = scalar_lea.vmem %s2028_s0, %s1625_s26  ;;  %v1781_v12 = vld [vmem:[%s2030_s2] sm:$0xff]   ;;  %v1784_v15 = vld [vmem:[%s2029_s1 + $0x18] sm:$0xff]   ;;  %v1782_v38 = vld [vmem:[%s2030_s2 + $0x8] sm:$0xff]   ;;  %vm1486_vm2 = vcmask 519168  }
   0xf   : > { %v1775_v3 = vld [vmem:[%s247_s29 + $0x18] sm:$0xff]   ;;  %v1776_v4 = vld [vmem:[%s247_s29 + $0x10] sm:$0xff]   ;;  %v1777_v5 = vld [vmem:[%s247_s29 + $0x8] sm:$0xff]   ;;  %1686 = vmatprep.mubr.msk.bf16.mxu1 %vm541_vm1, %v1781_v12  ;;  %s255_s24 = scalar_lea.vmem %s2033_s5, %s1746_s17 }
  0x10   : > { %1666 = vmatprep.subr.bf16.mxu0 %v1775_v3  ;;  %v1778_v6 = vld [vmem:[%s247_s29] sm:$0xff]   ;;  %v607_v43 = vld [vmem:[%s2032_s4 + $0x10] sm:$0xff]  ;;  %v1786_v1 = vld [vmem:[%s2030_s2 + $0x18] sm:$0xff]  }
  0x11   : > { %1667 = vmatpush3.bf16.msra.mxu0 %v1775_v3  ;;  %v1785_v44 = vld [vmem:[%s2030_s2 + $0x10] sm:$0xff]  }
  0x12   : > { %1668 = vmatprep.subr.bf16.mxu0 %v1776_v4 }
  0x15   : > { %1669 = vmatpush3.bf16.msra.mxu0 %v1776_v4  ;;  %v739_v4 = vld [vmem:[%s2032_s4 + $0x18] sm:$0xff] }
  0x16   : > { %1670 = vmatprep.subr.bf16.mxu0 %v1777_v5 }
  0x19   : > { %1671 = vmatpush3.bf16.msra.mxu0 %v1777_v5  ;;  %v1787_v5 = vld [vmem:[%s2030_s2 + $0x20] sm:$0xff]  }
  0x1a   : > { %1672 = vmatprep.subr.bf16.mxu0 %v1778_v6 }
  0x1d   : > { %1673 = vmatpush3.bf16.msra.mxu0 %v1778_v6 }
  0x20   : > { %1675 = vmatmul.mubr.msk.bf16.vlgmr.msra.gmra.mxu0 %vm390_vm0, %v1780_v7 }
  0x21   : > { %1678 = vmatprep.mubr.msk.bf16.mxu0 %vm390_vm0, %v1783_v14 }
  0x28   : > { %1679 = vmatmul.mubr.msk.bf16.gmra.mxu0 %vm390_vm0, %v1784_v15 }
  0x36   : > { %1773 = vset.pattern.permute.xlu0 %v1823_v2 }
  0x89   : > { %v290_v8 = vpop.trf.xlu0 }
  0x8a   : > { %308 = vperm.xlu1 %1774, %v290_v8  }
  0x8d   : > { %v291_v9 = vpop.trf.xlu0 }
  0x91   : > { %v292_v10 = vpop.trf.xlu0 }
  0x92   : > { %318 = vperm.xlu0 %1773, %v292_v10  }
  0x95   : > { %v293_v11 = vpop.trf.xlu0 }
  0x96   : > { %323 = vperm.xlu1 %1774, %v293_v11  }
  0x99   : > { %v1904_v16 = vpop.trf.xlu0 }
  0x9a   : > { %313 = vperm.xlu1 %1774, %v291_v9  }
  0x9d   : > { %v1906_v17 = vpop.trf.xlu0 }
  0xa1   : > { %v1908_v18 = vpop.trf.xlu0 }
  0xa5   : > { %v1910_v19 = vpop.trf.xlu0 }
  0xc3   : > { %479 = vxpose.xlu1.b32.start.end [1/1] (short) (narrow) %v478_v13, 32 }
  0xe0   : > { %v1676_v20 = vpop.f32.mrf.mxu0 }
  0xe2   : > { %v437_v23 = vpop.f32.mrf.mxu0 }
  0xe4   : > { %v1677_v25 = vpop.f32.mrf.mxu0 }
  0xe6   : > { %v440_v31 = vpop.f32.mrf.mxu0 }
  0xe8   : > { %v1680_v13 = vpop.f32.mrf.mxu0 }
  0xea   : > { %v453_v15 = vpop.f32.mrf.mxu0 }
 0x105   : > { %v309_v21 = vpop.permute.xlu1 %308 }
 0x106   : > { %v438_v28 = vadd.f32 %v437_v23, %v309_v21 }
 0x108   : > { %v468_v35 = vmax.f32 %v438_v28, 0.0 }
 0x10d   : > { %v319_v22 = vpop.permute.xlu0 %318 }
 0x10e   : > { %v446_v24 = vadd.f32 %v1676_v20, %v319_v22  ;;  %v1681_v20 = vpop.f32.mrf.mxu0 }
 0x110   : > { %v470_v29 = vmax.f32 %v446_v24, 0.0  ;;  %v456_v23 = vpop.f32.mrf.mxu0 }
 0x111   : > { %v324_v26 = vpop.permute.xlu1 %323 }
 0x112   : > { %v449_v27 = vadd.f32 %v1677_v25, %v324_v26 }
 0x114   : > { %v471_v30 = vmax.f32 %v449_v27, 0.0 }
 0x115   : > { %v314_v32 = vpop.permute.xlu1 %313 }
 0x116   : > { %v441_v33 = vadd.f32 %v440_v31, %v314_v32  ;;  %v477_v34 = vpack.c.bf16 %v471_v30, %v470_v29 }
 0x118   : > { %v469_v36 = vmax.f32 %v441_v33, 0.0  ;;  %1682 = vmatprep.subr.bf16.mxu1 %v477_v34 }
 0x119   : > { %1683 = vmatpush3.bf16.msra.mxu1 %v477_v34 }
 0x11a   : > { %v476_v37 = vpack.c.bf16 %v469_v36, %v468_v35 }
 0x11c   : > { %1684 = vmatprep.subr.bf16.mxu1 %v476_v37 }
 0x11d   : > { %1685 = vmatpush3.bf16.msra.mxu1 %v476_v37 }
 0x120   : > { %1687 = vmatmul.mubr.msk.bf16.vlgmr.msra.gmra.mxu1 %vm541_vm1, %v1782_v38 }
 0x121   : > { %1694 = vmatprep.mubr.msk.bf16.mxu1 %vm541_vm1, %v1785_v44  ;;  %v1788_v44 = vld [vmem:[%s2030_s2 + $0x28] sm:$0xff]  }
 0x13f   : > { %v495_v39 = vpop.trf.xlu1 }
 0x140   : > { %513 = vperm.xlu0 %1773, %v495_v39  }
 0x143   : > { %v496_v40 = vpop.trf.xlu1 }
 0x147   : > { %v497_v41 = vpop.trf.xlu1 }
 0x148   : > { %523 = vperm.xlu1 %1774, %v497_v41  }
 0x14b   : > { %v498_v42 = vpop.trf.xlu1 }
 0x14c   : > { %528 = vperm.xlu0 %1773, %v498_v42  }
 0x150   : > { %518 = vperm.xlu0 %1773, %v496_v40  }
 0x16e   : > { %608 = vxpose.xlu0.b32.start.end [1/1] (short) (narrow) %v607_v43, 32 }
 0x1bb   : > { %v514_v45 = vpop.permute.xlu0 %513 }
 0x1c3   : > { %v524_v48 = vpop.permute.xlu1 %523 }
 0x1c7   : > { %v529_v46 = vpop.permute.xlu0 %528 }
 0x1cb   : > { %v519_v54 = vpop.permute.xlu0 %518 }
 0x1e0   : > { %v1688_v47 = vpop.f32.mrf.mxu1 }
 0x1e1   : > { %v591_v50 = vadd.f32 %v1688_v47, %v524_v48 }
 0x1e2   : > { %v582_v49 = vpop.f32.mrf.mxu1 }
 0x1e3   : > { %v583_v52 = vadd.f32 %v582_v49, %v514_v45  ;;  %v599_v56 = vmax.f32 %v591_v50, 0.0  ;;  %v867_v45 = vld [vmem:[%s2032_s4 + $0x20] sm:$0xff] }
 0x1e4   : > { %v1689_v51 = vpop.f32.mrf.mxu1 }
 0x1e5   : > { %v594_v53 = vadd.f32 %v1689_v51, %v529_v46  ;;  %v597_v59 = vmax.f32 %v583_v52, 0.0  ;;  %v1789_v46 = vld [vmem:[%s2030_s2 + $0x30] sm:$0xff]  }
 0x1e6   : > { %v585_v55 = vpop.f32.mrf.mxu1  ;;  %1710 = vmatprep.mubr.msk.bf16.mxu0 %vm541_vm1, %v1789_v46 }
 0x1e7   : > { %v600_v57 = vmax.f32 %v594_v53, 0.0  ;;  %v586_v58 = vadd.f32 %v585_v55, %v519_v54 }
 0x1e9   : > { %v606_v60 = vpack.c.bf16 %v600_v57, %v599_v56  ;;  %v598_v61 = vmax.f32 %v586_v58, 0.0 }
 0x1ea   : > { %v624_v62 = vpop.trf.xlu0 }
 0x1eb   : > { %v605_v63 = vpack.c.bf16 %v598_v61, %v597_v59  ;;  %1690 = vmatprep.subr.bf16.mxu1 %v606_v60 }
 0x1ec   : > { %1691 = vmatpush3.bf16.msra.mxu1 %v606_v60 }
 0x1ed   : > { %1692 = vmatprep.subr.bf16.mxu1 %v605_v63 }
 0x1ee   : > { %v625_v0 = vpop.trf.xlu0 }
 0x1ef   : > { %647 = vperm.xlu0 %1773, %v625_v0  }
 0x1f0   : > { %1693 = vmatpush3.bf16.msra.mxu1 %v605_v63 }
 0x1f2   : > { %v626_v2 = vpop.trf.xlu0 }
 0x1f3   : > { %652 = vperm.xlu1 %1774, %v626_v2   ;;  %1695 = vmatmul.mubr.msk.bf16.vlgmr.msra.gmra.mxu1 %vm541_vm1, %v1786_v1 }
 0x1f4   : > { %1702 = vmatprep.mubr.msk.bf16.mxu1 %vm541_vm1, %v1787_v5  ;;  %v995_v5 = vld [vmem:[%s2032_s4 + $0x28] sm:$0xff] }
 0x1f6   : > { %v627_v3 = vpop.trf.xlu0 }
 0x1f7   : > { %657 = vperm.xlu1 %1774, %v627_v3  }
 0x1fb   : > { %338 = vperm.xlu1 %1774, %v1908_v18  }
 0x1ff   : > { %343 = vperm.xlu1 %1774, %v1910_v19  }
 0x203   : > { %642 = vperm.xlu1 %1774, %v624_v62  }
 0x207   : > { %328 = vperm.xlu1 %1774, %v1904_v16  }
 0x20b   : > { %333 = vperm.xlu1 %1774, %v1906_v17  }
 0x234   : > { %740 = vxpose.xlu1.b32.start.end [1/1] (short) (narrow) %v739_v4, 32 }
 0x26a   : > { %v648_v27 = vpop.permute.xlu0 %647 }
 0x26e   : > { %v653_v6 = vpop.permute.xlu1 %652 }
 0x272   : > { %v658_v7 = vpop.permute.xlu1 %657 }
 0x276   : > { %v339_v8 = vpop.permute.xlu1 %338 }
 0x277   : > { %v462_v28 = vadd.f32 %v1680_v13, %v339_v8 }
 0x27a   : > { %v344_v9 = vpop.permute.xlu1 %343 }
 0x27b   : > { %v465_v30 = vadd.f32 %v1681_v20, %v344_v9 }
 0x27e   : > { %v643_v10 = vpop.permute.xlu1 %642 }
 0x282   : > { %v329_v11 = vpop.permute.xlu1 %328 }
 0x283   : > { %v454_v34 = vadd.f32 %v453_v15, %v329_v11  ;;  %v1127_v15 = vld [vmem:[%s2032_s4 + $0x30] sm:$0xff] }
 0x286   : > { %v334_v12 = vpop.permute.xlu1 %333 }
 0x287   : > { %v457_v35 = vadd.f32 %v456_v23, %v334_v12 }
 0x2b0   : > { %v756_v14 = vpop.trf.xlu1 }
 0x2b3   : > { %v1696_v16 = vpop.f32.mrf.mxu1 }
 0x2b4   : > { %v719_v17 = vadd.f32 %v1696_v16, %v653_v6  ;;  %v757_v18 = vpop.trf.xlu1  ;;  %v1790_v6 = vld [vmem:[%s2030_s2 + $0x38] sm:$0xff]  }
 0x2b5   : > { %v710_v19 = vpop.f32.mrf.mxu1 }
 0x2b6   : > { %v711_v21 = vadd.f32 %v710_v19, %v643_v10  ;;  %v727_v24 = vmax.f32 %v719_v17, 0.0 }
 0x2b7   : > { %v1697_v22 = vpop.f32.mrf.mxu1 }
 0x2b8   : > { %v722_v25 = vadd.f32 %v1697_v22, %v658_v7  ;;  %v758_v26 = vpop.trf.xlu1  ;;  %v725_v31 = vmax.f32 %v711_v21, 0.0  ;;  %v1938_v36 = vadd.f32 %v727_v24, %v462_v28  ;;  %v1791_v7 = vld [vmem:[%s2030_s2 + $0x40] sm:$0xff]  }
 0x2b9   : > { %784 = vperm.xlu1 %1774, %v758_v26   ;;  %v713_v29 = vpop.f32.mrf.mxu1 }
 0x2ba   : > { %v728_v32 = vmax.f32 %v722_v25, 0.0  ;;  %v714_v33 = vadd.f32 %v713_v29, %v648_v27  ;;  %v1942_v40 = vadd.f32 %v725_v31, %v454_v34  ;;  %v1792_v31 = vld [vmem:[%s2030_s2 + $0x48] sm:$0xff]  }
 0x2bc   : > { %v1940_v37 = vadd.f32 %v728_v32, %v465_v30  ;;  %v726_v38 = vmax.f32 %v714_v33, 0.0  ;;  %v759_v39 = vpop.trf.xlu1 }
 0x2bd   : > { %789 = vperm.xlu0 %1773, %v759_v39  }
 0x2be   : > { %v1944_v41 = vadd.f32 %v726_v38, %v457_v35  ;;  %v738_v42 = vpack.c.bf16 %v1940_v37, %v1938_v36  ;;  %v1793_v35 = vld [vmem:[%s2030_s2 + $0x50] sm:$0xff]  }
 0x2c0   : > { %1698 = vmatprep.subr.bf16.mxu1 %v738_v42  ;;  %v737_v43 = vpack.c.bf16 %v1944_v41, %v1942_v40 }
 0x2c1   : > { %774 = vperm.xlu0 %1773, %v756_v14   ;;  %1699 = vmatpush3.bf16.msra.mxu1 %v738_v42 }
 0x2c2   : > { %1700 = vmatprep.subr.bf16.mxu1 %v737_v43 }
 0x2c5   : > { %779 = vperm.xlu0 %1773, %v757_v18   ;;  %1701 = vmatpush3.bf16.msra.mxu1 %v737_v43 }
 0x2c8   : > { %1703 = vmatmul.mubr.msk.bf16.vlgmr.msra.gmra.mxu1 %vm541_vm1, %v1788_v44  ;;  %v1251_v44 = vld [vmem:[%s2032_s4 + $0x38] sm:$0xff] }
 0x2c9   : > { %1718 = vmatprep.mubr.msk.bf16.mxu1 %vm541_vm1, %v1791_v7 }
 0x2e3   : > { %868 = vxpose.xlu0.b32.start.end [1/1] (short) (narrow) %v867_v45, 32 }
 0x334   : > { %v785_v55 = vpop.permute.xlu1 %784 }
 0x338   : > { %v790_v47 = vpop.permute.xlu0 %789 }
 0x33c   : > { %v775_v48 = vpop.permute.xlu0 %774 }
 0x340   : > { %v780_v49 = vpop.permute.xlu0 %779 }
 0x35f   : > { %v884_v50 = vpop.trf.xlu0 }
 0x363   : > { %v885_v51 = vpop.trf.xlu0 }
 0x367   : > { %v886_v52 = vpop.trf.xlu0 }
 0x368   : > { %912 = vperm.xlu1 %1774, %v886_v52  }
 0x36b   : > { %v887_v53 = vpop.trf.xlu0 }
 0x36c   : > { %902 = vperm.xlu1 %1774, %v884_v50   ;;  %917 = vperm.xlu0 %1773, %v887_v53  }
 0x370   : > { %907 = vperm.xlu1 %1774, %v885_v51  }
 0x388   : > { %v1704_v54 = vpop.f32.mrf.mxu1 }
 0x389   : > { %v851_v57 = vadd.f32 %v1704_v54, %v785_v55 }
 0x38a   : > { %v842_v56 = vpop.f32.mrf.mxu1 }
 0x38b   : > { %v843_v59 = vadd.f32 %v842_v56, %v775_v48  ;;  %v859_v62 = vmax.f32 %v851_v57, 0.0 }
 0x38c   : > { %v1705_v58 = vpop.f32.mrf.mxu1 }
 0x38d   : > { %v854_v60 = vadd.f32 %v1705_v58, %v790_v47  ;;  %v857_v1 = vmax.f32 %v843_v59, 0.0 }
 0x38e   : > { %v845_v61 = vpop.f32.mrf.mxu1 }
 0x38f   : > { %v860_v63 = vmax.f32 %v854_v60, 0.0  ;;  %v846_v0 = vadd.f32 %v845_v61, %v780_v49 }
 0x391   : > { %v866_v2 = vpack.c.bf16 %v860_v63, %v859_v62  ;;  %v858_v3 = vmax.f32 %v846_v0, 0.0  ;;  %v1794_v0 = vld [vmem:[%s2030_s2 + $0x58] sm:$0xff]  }
 0x393   : > { %v865_v4 = vpack.c.bf16 %v858_v3, %v857_v1  ;;  %1706 = vmatprep.subr.bf16.mxu0 %v866_v2 }
 0x394   : > { %1707 = vmatpush3.bf16.msra.mxu0 %v866_v2 }
 0x395   : > { %1708 = vmatprep.subr.bf16.mxu0 %v865_v4 }
 0x398   : > { %1709 = vmatpush3.bf16.msra.mxu0 %v865_v4  ;;  %v1795_v4 = vld [vmem:[%s2030_s2 + $0x60] sm:$0xff]  }
 0x399   : > { %996 = vxpose.xlu1.b32.start.end [1/1] (short) (narrow) %v995_v5, 32  ;;  %v1374_v5 = vld [vmem:[%s2032_s4 + $0x40] sm:$0xff] }
 0x39b   : > { %1711 = vmatmul.mubr.msk.bf16.vlgmr.msra.gmra.mxu0 %vm541_vm1, %v1790_v6 }
 0x39c   : > { %1726 = vmatprep.mubr.msk.bf16.mxu0 %vm541_vm1, %v1793_v35 }
 0x3e3   : > { %v913_v8 = vpop.permute.xlu1 %912 }
 0x3e7   : > { %v903_v9 = vpop.permute.xlu1 %902  ;;  %v918_v19 = vpop.permute.xlu0 %917 }
 0x3eb   : > { %v908_v10 = vpop.permute.xlu1 %907 }
 0x415   : > { %v1012_v11 = vpop.trf.xlu1 }
 0x419   : > { %v1013_v12 = vpop.trf.xlu1 }
 0x41d   : > { %v1014_v13 = vpop.trf.xlu1 }
 0x41e   : > { %1040 = vperm.xlu1 %1774, %v1014_v13  }
 0x421   : > { %v1015_v14 = vpop.trf.xlu1 }
 0x422   : > { %1045 = vperm.xlu0 %1773, %v1015_v14  }
 0x426   : > { %1030 = vperm.xlu0 %1773, %v1012_v11  }
 0x42a   : > { %1035 = vperm.xlu0 %1773, %v1013_v12  }
 0x448   : > { %1128 = vxpose.xlu0.b32.start.end [1/1] (short) (narrow) %v1127_v15, 32 }
 0x45b   : > { %v1712_v16 = vpop.f32.mrf.mxu0 }
 0x45c   : > { %v979_v18 = vadd.f32 %v1712_v16, %v913_v8 }
 0x45d   : > { %v970_v17 = vpop.f32.mrf.mxu0 }
 0x45e   : > { %v971_v21 = vadd.f32 %v970_v17, %v903_v9  ;;  %v987_v24 = vmax.f32 %v979_v18, 0.0  ;;  %v1796_v17 = vld [vmem:[%s2030_s2 + $0x68] sm:$0xff]  }
 0x45f   : > { %v1713_v20 = vpop.f32.mrf.mxu0 }
 0x460   : > { %v982_v22 = vadd.f32 %v1713_v20, %v918_v19  ;;  %v985_v27 = vmax.f32 %v971_v21, 0.0 }
 0x461   : > { %v973_v23 = vpop.f32.mrf.mxu0 }
 0x462   : > { %v988_v25 = vmax.f32 %v982_v22, 0.0  ;;  %v974_v26 = vadd.f32 %v973_v23, %v908_v10 }
 0x464   : > { %v994_v28 = vpack.c.bf16 %v988_v25, %v987_v24  ;;  %v986_v29 = vmax.f32 %v974_v26, 0.0  ;;  %v1797_v24 = vld [vmem:[%s2031_s3] sm:$0xff]  }
 0x466   : > { %v993_v30 = vpack.c.bf16 %v986_v29, %v985_v27  ;;  %1714 = vmatprep.subr.bf16.mxu1 %v994_v28 }
 0x467   : > { %1715 = vmatpush3.bf16.msra.mxu1 %v994_v28 }
 0x468   : > { %1716 = vmatprep.subr.bf16.mxu1 %v993_v30 }
 0x46b   : > { %1717 = vmatpush3.bf16.msra.mxu1 %v993_v30 }
 0x46e   : > { %1719 = vmatmul.mubr.msk.bf16.vlgmr.msra.gmra.mxu1 %vm541_vm1, %v1792_v31 }
 0x46f   : > { %1734 = vmatprep.mubr.msk.bf16.mxu1 %vm541_vm1, %v1795_v4 }
 0x499   : > { %v1041_v45 = vpop.permute.xlu1 %1040 }
 0x49d   : > { %v1046_v32 = vpop.permute.xlu0 %1045 }
 0x4a1   : > { %v1031_v33 = vpop.permute.xlu0 %1030 }
 0x4a5   : > { %v1036_v34 = vpop.permute.xlu0 %1035 }
 0x4c4   : > { %v1144_v38 = vpop.trf.xlu0 }
 0x4c8   : > { %v1145_v39 = vpop.trf.xlu0 }
 0x4cc   : > { %v1146_v42 = vpop.trf.xlu0 }
 0x4cd   : > { %1172 = vperm.xlu1 %1774, %v1146_v42  }
 0x4d0   : > { %v1147_v43 = vpop.trf.xlu0 }
 0x4d1   : > { %1162 = vperm.xlu1 %1774, %v1144_v38   ;;  %1177 = vperm.xlu0 %1773, %v1147_v43   ;;  %v1798_v38 = vld [vmem:[%s2031_s3 + $0x8] ss:$0 sps:$4 sm:$0x33]  }
 0x4d5   : > { %1167 = vperm.xlu1 %1774, %v1145_v39  }
 0x4fe   : > { %1252 = vxpose.xlu1.b32.start.end [1/1] (short) (narrow) %v1251_v44, 32 }
 0x52e   : > { %v1720_v46 = vpop.f32.mrf.mxu1 }
 0x52f   : > { %v1107_v47 = vadd.f32 %v1720_v46, %v1041_v45 }
 0x530   : > { %v1098_v48 = vpop.f32.mrf.mxu1 }
 0x531   : > { %v1099_v49 = vadd.f32 %v1098_v48, %v1031_v33  ;;  %v1115_v51 = vmax.f32 %v1107_v47, 0.0 }
 0x532   : > { %v1721_v50 = vpop.f32.mrf.mxu1 }
 0x533   : > { %v1110_v52 = vadd.f32 %v1721_v50, %v1046_v32  ;;  %v1113_v54 = vmax.f32 %v1099_v49, 0.0  ;;  %v1119_v57 = vadd.f32 %v1115_v51, %v1938_v36 }
 0x534   : > { %v1101_v53 = vpop.f32.mrf.mxu1 }
 0x535   : > { %v1116_v55 = vmax.f32 %v1110_v52, 0.0  ;;  %v1102_v56 = vadd.f32 %v1101_v53, %v1036_v34  ;;  %v1117_v60 = vadd.f32 %v1113_v54, %v1942_v40 }
 0x537   : > { %v1120_v58 = vadd.f32 %v1116_v55, %v1940_v37  ;;  %v1114_v59 = vmax.f32 %v1102_v56, 0.0 }
 0x539   : > { %v1118_v61 = vadd.f32 %v1114_v59, %v1944_v41  ;;  %v1126_v62 = vpack.c.bf16 %v1120_v58, %v1119_v57 }
 0x53b   : > { %1722 = vmatprep.subr.bf16.mxu0 %v1126_v62  ;;  %v1125_v63 = vpack.c.bf16 %v1118_v61, %v1117_v60 }
 0x53c   : > { %1723 = vmatpush3.bf16.msra.mxu0 %v1126_v62 }
 0x53d   : > { %1724 = vmatprep.subr.bf16.mxu0 %v1125_v63 }
 0x540   : > { %1725 = vmatpush3.bf16.msra.mxu0 %v1125_v63 }
 0x543   : > { %1727 = vmatmul.mubr.msk.bf16.vlgmr.msra.gmra.mxu0 %vm541_vm1, %v1794_v0 }
 0x544   : > { %1742 = vmatprep.mubr.msk.bf16.mxu0 %vm541_vm1, %v1797_v24 }
 0x548   : > { %v1173_v36 = vpop.permute.xlu1 %1172 }
 0x54c   : > { %v1163_v1 = vpop.permute.xlu1 %1162  ;;  %v1178_v8 = vpop.permute.xlu0 %1177 }
 0x550   : > { %v1168_v37 = vpop.permute.xlu1 %1167 }
 0x57a   : > { %v1268_v2 = vpop.trf.xlu1 }
 0x57e   : > { %v1269_v3 = vpop.trf.xlu1 }
 0x582   : > { %v1270_v40 = vpop.trf.xlu1 }
 0x583   : > { %1296 = vperm.xlu1 %1774, %v1270_v40  }
 0x586   : > { %v1271_v41 = vpop.trf.xlu1 }
 0x587   : > { %1301 = vperm.xlu0 %1773, %v1271_v41  }
 0x58b   : > { %1286 = vperm.xlu0 %1773, %v1268_v2  }
 0x58f   : > { %1291 = vperm.xlu0 %1773, %v1269_v3  }
 0x5ad   : > { %1375 = vxpose.xlu0.b32.start.end [1/1] (short) (narrow) %v1374_v5, 24 }
 0x5fe   : > { %v1297_v27 = vpop.permute.xlu1 %1296 }
 0x602   : > { %v1302_v18 = vpop.permute.xlu0 %1301 }
 0x603   : > { %v1728_v6 = vpop.f32.mrf.mxu0 }
 0x604   : > { %v1239_v10 = vadd.f32 %v1728_v6, %v1173_v36 }
 0x605   : > { %v1230_v7 = vpop.f32.mrf.mxu0 }
 0x606   : > { %v1231_v13 = vadd.f32 %v1230_v7, %v1163_v1  ;;  %v1287_v19 = vpop.permute.xlu0 %1286 }
 0x607   : > { %v1729_v9 = vpop.f32.mrf.mxu0 }
 0x608   : > { %v1242_v11 = vadd.f32 %v1729_v9, %v1178_v8 }
 0x609   : > { %v1233_v12 = vpop.f32.mrf.mxu0 }
 0x60a   : > { %v1250_v14 = vpack.c.bf16 %v1242_v11, %v1239_v10  ;;  %v1234_v15 = vadd.f32 %v1233_v12, %v1168_v37  ;;  %v1292_v20 = vpop.permute.xlu0 %1291 }
 0x60c   : > { %v1249_v16 = vpack.c.bf16 %v1234_v15, %v1231_v13  ;;  %1730 = vmatprep.subr.bf16.mxu1 %v1250_v14 }
 0x60d   : > { %1731 = vmatpush3.bf16.msra.mxu1 %v1250_v14 }
 0x60e   : > { %1732 = vmatprep.subr.bf16.mxu1 %v1249_v16 }
 0x611   : > { %1733 = vmatpush3.bf16.msra.mxu1 %v1249_v16 }
 0x614   : > { %1735 = vmatmul.mubr.msk.bf16.vlgmr.msra.gmra.mxu1 %vm541_vm1, %v1796_v17 }
 0x629   : > { %v1391_v21 = vpop.trf.xlu0 }
 0x62a   : > { %1409 = vperm.xlu1 %1774, %v1391_v21  }
 0x62d   : > { %v1392_v22 = vpop.trf.xlu0 }
 0x62e   : > { %1414 = vperm.xlu0 %1773, %v1392_v22  }
 0x631   : > { %v1393_v23 = vpop.trf.xlu0 }
 0x632   : > { %1419 = vperm.xlu1 %1774, %v1393_v23  }
 0x6a5   : > { %v1410_v39 = vpop.permute.xlu1 %1409 }
 0x6a9   : > { %v1415_v48 = vpop.permute.xlu0 %1414 }
 0x6ad   : > { %v1420_v42 = vpop.permute.xlu1 %1419 }
 0x6d4   : > { %v1736_v25 = vpop.f32.mrf.mxu1 }
 0x6d5   : > { %v1363_v29 = vadd.f32 %v1736_v25, %v1297_v27 }
 0x6d6   : > { %v1354_v26 = vpop.f32.mrf.mxu1 }
 0x6d7   : > { %v1355_v32 = vadd.f32 %v1354_v26, %v1287_v19 }
 0x6d8   : > { %v1737_v28 = vpop.f32.mrf.mxu1 }
 0x6d9   : > { %v1366_v30 = vadd.f32 %v1737_v28, %v1302_v18 }
 0x6da   : > { %v1357_v31 = vpop.f32.mrf.mxu1 }
 0x6db   : > { %v1373_v33 = vpack.c.bf16 %v1366_v30, %v1363_v29  ;;  %v1358_v34 = vadd.f32 %v1357_v31, %v1292_v20 }
 0x6dd   : > { %v1372_v35 = vpack.c.bf16 %v1358_v34, %v1355_v32  ;;  %1738 = vmatprep.subr.bf16.mxu0 %v1373_v33 }
 0x6de   : > { %1739 = vmatpush3.bf16.msra.mxu0 %v1373_v33 }
 0x6df   : > { %1740 = vmatprep.subr.bf16.mxu0 %v1372_v35 }
 0x6e2   : > { %1741 = vmatpush3.bf16.msra.mxu0 %v1372_v35 }
 0x6e5   : > { %1743 = vmatmul.mubr.msk.bf16.vlgmr.msra.gmra.mxu0 %vm541_vm1, %v1798_v38 }
 0x7a5   : > { %v1744_v43 = vpop.f32.mrf.mxu0 }
 0x7a6   : > { %v1479_v44 = vadd.f32 %v1744_v43, %v1420_v42 }
 0x7a7   : > { %v1470_v45 = vpop.f32.mrf.mxu0 }
 0x7a8   : > { %1487 = vst.msk [vmem:[%s255_s24 + $0x10] sm:$0xf] %vm1486_vm2, %v1479_v44  ;;  %v1471_v46 = vadd.f32 %v1470_v45, %v1410_v39 }
 0x7a9   : > { %v1745_v47 = vpop.f32.mrf.mxu0 }
 0x7aa   : > { %1484 = vst.msk [vmem:[%s255_s24] sm:$0xff] %vm390_vm0, %v1471_v46 }
 0x7ab   : > { %v1473_v49 = vpop.f32.mrf.mxu0 }
 0x7ac   : > { %v1474_v50 = vadd.f32 %v1473_v49, %v1415_v48 }
 0x7ae   : > { %1485 = vst.msk [vmem:[%s255_s24 + $0x8] sm:$0xff] %vm390_vm0, %v1474_v50 }
 0x7af PF: > { %s15_s20 = sadd.s32 1, %s1821_s20   ;;  %s2034_s18 = smov %s1817_s19 }
 0x7b0   : > { %p12_p5 = scmp.ge.s32.totalorder %s15_s20, 4   ;;  %s2035_s19 = smov %s2037_s21 }
 0x7b2   :  { %14 = sbr.rel (!%p12_p5) target bundleno = 2 (0x2), region = 70 }

// kernel: ace_head_pallas.1
= control target key start
LH: loop header
LB: loop body
LE: loop exit
PB: predicated region body
PF: predicated region fallthrough
CT: control target
= control target key end

     0   :  { %s1595_s18 = smov 0   ;;  %s1597_s19 = smov 0   ;;  %s1847_s0 = inlined_call_operand.vmem [shape: bf16[2,64,64], index: 0, kind: input, shape index: {}]   ;;  %s1848_s1 = inlined_call_operand.vmem [shape: bf16[64,64], index: 1, kind: input, shape index: {}]   ;;  %s1849_s2 = inlined_call_operand.vmem [shape: bf16[224,32], index: 2, kind: input, shape index: {}]   ;;  %s1850_s3 = inlined_call_operand.vmem [shape: bf16[20,32], index: 3, kind: input, shape index: {}]   ;;  %s1851_s4 = inlined_call_operand.vmem [shape: f32[308,1], index: 4, kind: input, shape index: {}]   ;;  %s1852_s5 = inlined_call_operand.vmem [shape: f32[2,20,64], index: 5, kind: output, shape index: {}]  }
   0x1   :  { %s1599_s20 = smov 0  }
   0x2 LB: > { %s27_s21 = sadd.s32 1, %s1558_s19  ;;  %p1317_p0 = scmp.ge.s32.totalorder %s1562_s20, 1  ;;  %s1562_s20 = sphi %s1599_s20, %s15_s20   ;;  %s1558_s19 = sphi %s1597_s19, %s1854_s19   ;;  %s1554_s18 = sphi %s1595_s18, %s1853_s18  }
   0x3   : > { %p29_p1 = scmp.ge.s32.totalorder %s27_s21, 2  ;;  %p206_p2 = scmp.lt.s32.totalorder %s1562_s20, 3 }
   0x5   : > { %s1856_s21 = smov (%p29_p1, %s27_s21), 0  ;;  %p207_p3 = pnand %p1317_p0, %p206_p2 }
   0x6   : > { %p240_p4 = scmp.lt.s32.totalorder (!%p207_p3), %s1554_s18, 1 }
   0x7   : > { %210 = sbr.rel (%p207_p3) target bundleno = 1922 (0x782), region = 40 }
   0xc   : > { %v275_v0 = vld [vmem:[%s1851_s4 + $0x10] sm:$0xff]  ;;  %v1564_v1 = vmov 0   ;;  %v1520_v2 = vld [vmem:[%s1848_s1] sm:$0xff]   ;;  %vm365_vm0 = vcmask 523264   ;;  %s1858_s18 = smov (!%p240_p4, %s1554_s18), 1  ;;  %v276_v3 = vld [vmem:[%s1851_s4 + $0x18] sm:$0xff] }
   0xd   : > { %1514 = vset.pattern.permute.xlu0 %v1564_v1  ;;  %1515 = vset.pattern.permute.xlu1 %v1564_v1  ;;  %v273_v4 = vld [vmem:[%s1851_s4] sm:$0xff]  ;;  %s1367_s30 = sshll.u32 %s1858_s18, 5  ;;  %v455_v5 = vld [vmem:[%s1851_s4 + $0x50] sm:$0xff]  ;;  %v274_v6 = vld [vmem:[%s1851_s4 + $0x8] sm:$0xff]  ;;  %vm487_vm1 = vcmask 261120   ;;  %s1488_s14 = smul.u32 24, %s1858_s18 }
   0xe   : > { %293 = vperm.xlu0 %1514, %v275_v0   ;;  %1416 = vmatprep.mubr.msk.bf16.mxu0 %vm365_vm0, %v1520_v2  ;;  %s247_s8 = scalar_lea.vmem %s1847_s0, %s1367_s30  ;;  %v456_v10 = vld [vmem:[%s1851_s4 + $0x58] sm:$0xff]  ;;  %v453_v11 = vld [vmem:[%s1851_s4 + $0x40] sm:$0xff]  ;;  %v454_v12 = vld [vmem:[%s1851_s4 + $0x48] sm:$0xff]  ;;  %vm1228_vm2 = vcmask 519168  }
   0xf   : > { %283 = vperm.xlu1 %1515, %v273_v4   ;;  %v1516_v7 = vld [vmem:[%s247_s8 + $0x18] sm:$0xff]   ;;  %v1517_v8 = vld [vmem:[%s247_s8 + $0x10] sm:$0xff]   ;;  %v1518_v9 = vld [vmem:[%s247_s8 + $0x8] sm:$0xff]   ;;  %s255_s17 = scalar_lea.vmem %s1852_s5, %s1488_s14 }
  0x10   : > { %1408 = vmatprep.subr.bf16.mxu0 %v1516_v7  ;;  %v1519_v13 = vld [vmem:[%s247_s8] sm:$0xff]   ;;  %v555_v14 = vld [vmem:[%s1851_s4 + $0x70] sm:$0xff]  ;;  %v556_v15 = vld [vmem:[%s1851_s4 + $0x78] sm:$0xff] }
  0x11   : > { %1409 = vmatpush3.bf16.msra.mxu0 %v1516_v7  ;;  %v279_v16 = vld [vmem:[%s1851_s4 + $0x30] sm:$0xff]  ;;  %v1521_v17 = vld [vmem:[%s1848_s1 + $0x8] sm:$0xff]   ;;  %v280_v19 = vld [vmem:[%s1851_s4 + $0x38] sm:$0xff] }
  0x12   : > { %298 = vperm.xlu0 %1514, %v276_v3   ;;  %1410 = vmatprep.subr.bf16.mxu0 %v1517_v8  ;;  %v1522_v18 = vld [vmem:[%s1848_s1 + $0x10] sm:$0xff]   ;;  %v553_v20 = vld [vmem:[%s1851_s4 + $0x60] sm:$0xff]  ;;  %v554_v21 = vld [vmem:[%s1851_s4 + $0x68] sm:$0xff] }
  0x13   : > { %288 = vperm.xlu1 %1515, %v274_v6   ;;  %v277_v22 = vld [vmem:[%s1851_s4 + $0x20] sm:$0xff]  ;;  %v1523_v23 = vld [vmem:[%s1848_s1 + $0x18] sm:$0xff]   ;;  %v278_v24 = vld [vmem:[%s1851_s4 + $0x28] sm:$0xff] }
  0x14   : > { %v658_v25 = vld [vmem:[%s1851_s4 + $0x90] sm:$0xff]  ;;  %v659_v26 = vld [vmem:[%s1851_s4 + $0x98] sm:$0xff]  ;;  %v656_v27 = vld [vmem:[%s1851_s4 + $0x80] sm:$0xff] }
  0x15   : > { %1411 = vmatpush3.bf16.msra.mxu0 %v1517_v8  ;;  %v657_v28 = vld [vmem:[%s1851_s4 + $0x88] sm:$0xff]  ;;  %v757_v29 = vld [vmem:[%s1851_s4 + $0xb0] sm:$0xff]  ;;  %v758_v30 = vld [vmem:[%s1851_s4 + $0xb8] sm:$0xff] }
  0x16   : > { %469 = vperm.xlu0 %1514, %v455_v5   ;;  %1412 = vmatprep.subr.bf16.mxu0 %v1518_v9  ;;  %v755_v31 = vld [vmem:[%s1851_s4 + $0xa0] sm:$0xff]  ;;  %v756_v32 = vld [vmem:[%s1851_s4 + $0xa8] sm:$0xff]  ;;  %v856_v33 = vld [vmem:[%s1851_s4 + $0xd0] sm:$0xff] }
  0x17   : > { %474 = vperm.xlu1 %1515, %v456_v10   ;;  %v857_v34 = vld [vmem:[%s1851_s4 + $0xd8] sm:$0xff]  ;;  %v854_v35 = vld [vmem:[%s1851_s4 + $0xc0] sm:$0xff]  ;;  %v855_v36 = vld [vmem:[%s1851_s4 + $0xc8] sm:$0xff] }
  0x18   : > { %v959_v37 = vld [vmem:[%s1851_s4 + $0xf0] sm:$0xff]  ;;  %v960_v38 = vld [vmem:[%s1851_s4 + $0xf8] sm:$0xff]  ;;  %v957_v39 = vld [vmem:[%s1851_s4 + $0xe0] sm:$0xff] }
  0x19   : > { %1413 = vmatpush3.bf16.msra.mxu0 %v1518_v9  ;;  %v958_v40 = vld [vmem:[%s1851_s4 + $0xe8] sm:$0xff]  ;;  %v1054_v41 = vld [vmem:[%s1851_s4 + $0x110] sm:$0xff]  ;;  %v1055_v42 = vld [vmem:[%s1851_s4 + $0x118] sm:$0xff] }
  0x1a   : > { %459 = vperm.xlu0 %1514, %v453_v11   ;;  %1414 = vmatprep.subr.bf16.mxu0 %v1519_v13  ;;  %v1052_v43 = vld [vmem:[%s1851_s4 + $0x100] sm:$0xff]  ;;  %v1053_v44 = vld [vmem:[%s1851_s4 + $0x108] sm:$0xff]  ;;  %v1148_v47 = vld [vmem:[%s1851_s4 + $0x130] sm:$0xf] }
  0x1b   : > { %464 = vperm.xlu1 %1515, %v454_v12   ;;  %v1146_v45 = vld [vmem:[%s1851_s4 + $0x120] sm:$0xff]  ;;  %v1147_v46 = vld [vmem:[%s1851_s4 + $0x128] sm:$0xff]  ;;  %v1526_v4 = vld [vmem:[%s1849_s2 + $0x10] sm:$0xff]  }
  0x1c   : > { %v1524_v48 = vld [vmem:[%s1849_s2] sm:$0xff]   ;;  %v1525_v3 = vld [vmem:[%s1849_s2 + $0x8] sm:$0xff]  }
  0x1d   : > { %1415 = vmatpush3.bf16.msra.mxu0 %v1519_v13  ;;  %1428 = vmatprep.mubr.msk.bf16.mxu1 %vm487_vm1, %v1524_v48 }
  0x1e   : > { %569 = vperm.xlu0 %1514, %v555_v14  }
  0x1f   : > { %574 = vperm.xlu1 %1515, %v556_v15  }
  0x20   : > { %1417 = vmatmul.mubr.msk.bf16.vlgmr.msra.gmra.mxu0 %vm365_vm0, %v1521_v17 }
  0x21   : > { %1420 = vmatprep.mubr.msk.bf16.mxu0 %vm365_vm0, %v1522_v18 }
  0x22   : > { %313 = vperm.xlu0 %1514, %v279_v16  }
  0x23   : > { %318 = vperm.xlu1 %1515, %v280_v19  }
  0x26   : > { %559 = vperm.xlu0 %1514, %v553_v20  }
  0x27   : > { %564 = vperm.xlu1 %1515, %v554_v21  }
  0x28   : > { %1421 = vmatmul.mubr.msk.bf16.gmra.mxu0 %vm365_vm0, %v1523_v23  ;;  %v1527_v23 = vld [vmem:[%s1849_s2 + $0x18] sm:$0xff]  }
  0x2a   : > { %303 = vperm.xlu0 %1514, %v277_v22  }
  0x2b   : > { %308 = vperm.xlu1 %1515, %v278_v24   ;;  %v1528_v24 = vld [vmem:[%s1849_s2 + $0x20] sm:$0xff]  }
  0x2e   : > { %672 = vperm.xlu0 %1514, %v658_v25  }
  0x2f   : > { %677 = vperm.xlu1 %1515, %v659_v26  }
  0x32   : > { %662 = vperm.xlu0 %1514, %v656_v27  }
  0x33   : > { %667 = vperm.xlu1 %1515, %v657_v28  }
  0x36   : > { %771 = vperm.xlu0 %1514, %v757_v29  }
  0x37   : > { %776 = vperm.xlu1 %1515, %v758_v30  }
  0x3a   : > { %761 = vperm.xlu0 %1514, %v755_v31  }
  0x3b   : > { %766 = vperm.xlu1 %1515, %v756_v32  }
  0x3e   : > { %870 = vperm.xlu0 %1514, %v856_v33  }
  0x3f   : > { %875 = vperm.xlu1 %1515, %v857_v34  }
  0x42   : > { %860 = vperm.xlu0 %1514, %v854_v35  }
  0x43   : > { %865 = vperm.xlu1 %1515, %v855_v36  }
  0x46   : > { %973 = vperm.xlu0 %1514, %v959_v37  }
  0x47   : > { %978 = vperm.xlu1 %1515, %v960_v38  }
  0x4a   : > { %963 = vperm.xlu0 %1514, %v957_v39  }
  0x4b   : > { %968 = vperm.xlu1 %1515, %v958_v40  }
  0x4e   : > { %1068 = vperm.xlu0 %1514, %v1054_v41  }
  0x4f   : > { %1073 = vperm.xlu1 %1515, %v1055_v42  }
  0x52   : > { %1058 = vperm.xlu0 %1514, %v1052_v43  }
  0x53   : > { %1063 = vperm.xlu1 %1515, %v1053_v44  }
  0x56   : > { %1151 = vperm.xlu0 %1514, %v1146_v45  }
  0x57   : > { %1156 = vperm.xlu1 %1515, %v1147_v46  }
  0x5a   : > { %1161 = vperm.xlu0 %1514, %v1148_v47  }
  0x89   : > { %v294_v49 = vpop.permute.xlu0 %293 }
  0x8a   : > { %v284_v50 = vpop.permute.xlu1 %283 }
  0x8d   : > { %v299_v54 = vpop.permute.xlu0 %298 }
  0x8e   : > { %v289_v58 = vpop.permute.xlu1 %288 }
  0x91   : > { %v470_v5 = vpop.permute.xlu0 %469 }
  0x92   : > { %v475_v6 = vpop.permute.xlu1 %474 }
  0x95   : > { %v460_v10 = vpop.permute.xlu0 %459 }
  0x96   : > { %v465_v14 = vpop.permute.xlu1 %464 }
  0x99   : > { %v570_v25 = vpop.permute.xlu0 %569 }
  0x9a   : > { %v575_v26 = vpop.permute.xlu1 %574 }
  0x9d   : > { %v314_v28 = vpop.permute.xlu0 %313 }
  0x9e   : > { %v319_v29 = vpop.permute.xlu1 %318 }
  0xa1   : > { %v560_v32 = vpop.permute.xlu0 %559 }
  0xa2   : > { %v565_v33 = vpop.permute.xlu1 %564 }
  0xa5   : > { %v304_v44 = vpop.permute.xlu0 %303 }
  0xe0   : > { %v1418_v51 = vpop.f32.mrf.mxu0 }
  0xe1   : > { %v421_v53 = vadd.f32 %v1418_v51, %v294_v49  ;;  %v309_v49 = vpop.permute.xlu1 %308 }
  0xe2   : > { %v412_v52 = vpop.f32.mrf.mxu0 }
  0xe3   : > { %v413_v56 = vadd.f32 %v412_v52, %v284_v50  ;;  %v445_v60 = vmax.f32 %v421_v53, 0.0 }
  0xe4   : > { %v1419_v55 = vpop.f32.mrf.mxu0 }
  0xe5   : > { %v424_v57 = vadd.f32 %v1419_v55, %v299_v54  ;;  %v443_v63 = vmax.f32 %v413_v56, 0.0 }
  0xe6   : > { %v415_v59 = vpop.f32.mrf.mxu0 }
  0xe7   : > { %v446_v61 = vmax.f32 %v424_v57, 0.0  ;;  %v416_v62 = vadd.f32 %v415_v59, %v289_v58  ;;  %v1529_v59 = vld [vmem:[%s1849_s2 + $0x28] sm:$0xff]  }
  0xe8   : > { %v1422_v27 = vpop.f32.mrf.mxu0 }
  0xe9   : > { %v444_v0 = vmax.f32 %v416_v62, 0.0  ;;  %v452_v1 = vpack.c.bf16 %v446_v61, %v445_v60  ;;  %v437_v41 = vadd.f32 %v1422_v27, %v314_v28  ;;  %v1530_v60 = vld [vmem:[%s1849_s2 + $0x30] sm:$0xff]   ;;  %v673_v61 = vpop.permute.xlu0 %672  ;;  %v678_v62 = vpop.permute.xlu1 %677 }
  0xea   : > { %v428_v30 = vpop.f32.mrf.mxu0  ;;  %1452 = vmatprep.mubr.msk.bf16.mxu0 %vm487_vm1, %v1530_v60 }
  0xeb   : > { %v451_v2 = vpack.c.bf16 %v444_v0, %v443_v63  ;;  %1424 = vmatprep.subr.bf16.mxu1 %v452_v1  ;;  %v429_v50 = vadd.f32 %v428_v30, %v304_v44 }
  0xec   : > { %1425 = vmatpush3.bf16.msra.mxu1 %v452_v1  ;;  %v1423_v35 = vpop.f32.mrf.mxu0 }
  0xed   : > { %1426 = vmatprep.subr.bf16.mxu1 %v451_v2  ;;  %v440_v45 = vadd.f32 %v1423_v35, %v319_v29  ;;  %v1533_v35 = vld [vmem:[%s1849_s2 + $0x48] sm:$0xff]  }
  0xee   : > { %v431_v42 = vpop.f32.mrf.mxu0 }
  0xef   : > { %v432_v51 = vadd.f32 %v431_v42, %v309_v49 }
  0xf0   : > { %1427 = vmatpush3.bf16.msra.mxu1 %v451_v2  ;;  %v663_v2 = vpop.permute.xlu0 %662 }
  0xf3   : > { %1429 = vmatmul.mubr.msk.bf16.vlgmr.msra.gmra.mxu1 %vm487_vm1, %v1525_v3 }
  0xf4   : > { %1436 = vmatprep.mubr.msk.bf16.mxu1 %vm487_vm1, %v1526_v4 }
 0x1b3   : > { %v1430_v7 = vpop.f32.mrf.mxu1 }
 0x1b4   : > { %v537_v9 = vadd.f32 %v1430_v7, %v470_v5 }
 0x1b5   : > { %v528_v8 = vpop.f32.mrf.mxu1 }
 0x1b6   : > { %v529_v12 = vadd.f32 %v528_v8, %v460_v10  ;;  %v545_v16 = vmax.f32 %v537_v9, 0.0 }
 0x1b7   : > { %v1431_v11 = vpop.f32.mrf.mxu1 }
 0x1b8   : > { %v540_v13 = vadd.f32 %v1431_v11, %v475_v6  ;;  %v543_v19 = vmax.f32 %v529_v12, 0.0  ;;  %v668_v6 = vpop.permute.xlu1 %667 }
 0x1b9   : > { %v531_v15 = vpop.f32.mrf.mxu1 }
 0x1ba   : > { %v546_v17 = vmax.f32 %v540_v13, 0.0  ;;  %v532_v18 = vadd.f32 %v531_v15, %v465_v14  ;;  %v1531_v15 = vld [vmem:[%s1849_s2 + $0x38] sm:$0xff]  }
 0x1bc   : > { %v552_v20 = vpack.c.bf16 %v546_v17, %v545_v16  ;;  %v544_v21 = vmax.f32 %v532_v18, 0.0  ;;  %v1532_v16 = vld [vmem:[%s1849_s2 + $0x40] sm:$0xff]   ;;  %v772_v17 = vpop.permute.xlu0 %771  ;;  %v777_v18 = vpop.permute.xlu1 %776 }
 0x1be   : > { %v551_v22 = vpack.c.bf16 %v544_v21, %v543_v19  ;;  %1432 = vmatprep.subr.bf16.mxu1 %v552_v20 }
 0x1bf   : > { %1433 = vmatpush3.bf16.msra.mxu1 %v552_v20 }
 0x1c0   : > { %1434 = vmatprep.subr.bf16.mxu1 %v551_v22 }
 0x1c3   : > { %1435 = vmatpush3.bf16.msra.mxu1 %v551_v22  ;;  %v762_v22 = vpop.permute.xlu0 %761 }
 0x1c6   : > { %1437 = vmatmul.mubr.msk.bf16.vlgmr.msra.gmra.mxu1 %vm487_vm1, %v1527_v23 }
 0x1c7   : > { %1444 = vmatprep.mubr.msk.bf16.mxu1 %vm487_vm1, %v1528_v24 }
 0x286   : > { %v1438_v31 = vpop.f32.mrf.mxu1 }
 0x287   : > { %v636_v34 = vadd.f32 %v1438_v31, %v570_v25 }
 0x288   : > { %v627_v36 = vpop.f32.mrf.mxu1 }
 0x289   : > { %v628_v37 = vadd.f32 %v627_v36, %v560_v32  ;;  %v644_v39 = vmax.f32 %v636_v34, 0.0  ;;  %v1534_v36 = vld [vmem:[%s1849_s2 + $0x50] sm:$0xff]  }
 0x28a   : > { %v1439_v38 = vpop.f32.mrf.mxu1 }
 0x28b   : > { %v639_v40 = vadd.f32 %v1439_v38, %v575_v26  ;;  %v642_v46 = vmax.f32 %v628_v37, 0.0  ;;  %v1772_v52 = vadd.f32 %v644_v39, %v437_v41  ;;  %v767_v26 = vpop.permute.xlu1 %766  ;;  %v871_v37 = vpop.permute.xlu0 %870 }
 0x28c   : > { %v630_v43 = vpop.f32.mrf.mxu1 }
 0x28d   : > { %v645_v47 = vmax.f32 %v639_v40, 0.0  ;;  %v631_v48 = vadd.f32 %v630_v43, %v565_v33  ;;  %v1776_v55 = vadd.f32 %v642_v46, %v429_v50 }
 0x28f   : > { %v1774_v53 = vadd.f32 %v645_v47, %v440_v45  ;;  %v643_v54 = vmax.f32 %v631_v48, 0.0  ;;  %v876_v38 = vpop.permute.xlu1 %875  ;;  %v861_v41 = vpop.permute.xlu0 %860 }
 0x291   : > { %v1778_v56 = vadd.f32 %v643_v54, %v432_v51  ;;  %v655_v57 = vpack.c.bf16 %v1774_v53, %v1772_v52 }
 0x293   : > { %1440 = vmatprep.subr.bf16.mxu1 %v655_v57  ;;  %v654_v58 = vpack.c.bf16 %v1778_v56, %v1776_v55  ;;  %v866_v47 = vpop.permute.xlu1 %865 }
 0x294   : > { %1441 = vmatpush3.bf16.msra.mxu1 %v655_v57 }
 0x295   : > { %1442 = vmatprep.subr.bf16.mxu1 %v654_v58 }
 0x298   : > { %1443 = vmatpush3.bf16.msra.mxu1 %v654_v58 }
 0x29b   : > { %1445 = vmatmul.mubr.msk.bf16.vlgmr.msra.gmra.mxu1 %vm487_vm1, %v1529_v59 }
 0x29c   : > { %1460 = vmatprep.mubr.msk.bf16.mxu1 %vm487_vm1, %v1532_v16 }
 0x35b   : > { %v1446_v63 = vpop.f32.mrf.mxu1 }
 0x35c   : > { %v739_v1 = vadd.f32 %v1446_v63, %v673_v61  ;;  %v1535_v63 = vld [vmem:[%s1849_s2 + $0x58] sm:$0xff]  }
 0x35d   : > { %v730_v0 = vpop.f32.mrf.mxu1 }
 0x35e   : > { %v731_v4 = vadd.f32 %v730_v0, %v663_v2  ;;  %v747_v8 = vmax.f32 %v739_v1, 0.0 }
 0x35f   : > { %v1447_v3 = vpop.f32.mrf.mxu1 }
 0x360   : > { %v742_v5 = vadd.f32 %v1447_v3, %v678_v62  ;;  %v745_v11 = vmax.f32 %v731_v4, 0.0 }
 0x361   : > { %v733_v7 = vpop.f32.mrf.mxu1 }
 0x362   : > { %v748_v9 = vmax.f32 %v742_v5, 0.0  ;;  %v734_v10 = vadd.f32 %v733_v7, %v668_v6 }
 0x364   : > { %v754_v12 = vpack.c.bf16 %v748_v9, %v747_v8  ;;  %v746_v13 = vmax.f32 %v734_v10, 0.0 }
 0x366   : > { %v753_v14 = vpack.c.bf16 %v746_v13, %v745_v11  ;;  %1448 = vmatprep.subr.bf16.mxu0 %v754_v12  ;;  %v1537_v11 = vld [vmem:[%s1849_s2 + $0x68] sm:$0xff]  }
 0x367   : > { %1449 = vmatpush3.bf16.msra.mxu0 %v754_v12  ;;  %v1538_v12 = vld [vmem:[%s1850_s3] sm:$0xff]  }
 0x368   : > { %1450 = vmatprep.subr.bf16.mxu0 %v753_v14 }
 0x36b   : > { %1451 = vmatpush3.bf16.msra.mxu0 %v753_v14 }
 0x36e   : > { %1453 = vmatmul.mubr.msk.bf16.vlgmr.msra.gmra.mxu0 %vm487_vm1, %v1531_v15 }
 0x36f   : > { %1468 = vmatprep.mubr.msk.bf16.mxu0 %vm487_vm1, %v1534_v36 }
 0x42e   : > { %v1454_v19 = vpop.f32.mrf.mxu0 }
 0x42f   : > { %v838_v21 = vadd.f32 %v1454_v19, %v772_v17 }
 0x430   : > { %v829_v20 = vpop.f32.mrf.mxu0 }
 0x431   : > { %v830_v24 = vadd.f32 %v829_v20, %v762_v22  ;;  %v846_v28 = vmax.f32 %v838_v21, 0.0 }
 0x432   : > { %v1455_v23 = vpop.f32.mrf.mxu0 }
 0x433   : > { %v841_v25 = vadd.f32 %v1455_v23, %v777_v18  ;;  %v844_v31 = vmax.f32 %v830_v24, 0.0 }
 0x434   : > { %v832_v27 = vpop.f32.mrf.mxu0 }
 0x435   : > { %v847_v29 = vmax.f32 %v841_v25, 0.0  ;;  %v833_v30 = vadd.f32 %v832_v27, %v767_v26  ;;  %v1539_v27 = vld [vmem:[%s1850_s3 + $0x8] ss:$0 sps:$4 sm:$0x33]  }
 0x437   : > { %v853_v32 = vpack.c.bf16 %v847_v29, %v846_v28  ;;  %v845_v33 = vmax.f32 %v833_v30, 0.0 }
 0x439   : > { %v852_v34 = vpack.c.bf16 %v845_v33, %v844_v31  ;;  %1456 = vmatprep.subr.bf16.mxu1 %v853_v32 }
 0x43a   : > { %1457 = vmatpush3.bf16.msra.mxu1 %v853_v32 }
 0x43b   : > { %1458 = vmatprep.subr.bf16.mxu1 %v852_v34 }
 0x43e   : > { %1459 = vmatpush3.bf16.msra.mxu1 %v852_v34 }
 0x441   : > { %1461 = vmatmul.mubr.msk.bf16.vlgmr.msra.gmra.mxu1 %vm487_vm1, %v1533_v35 }
 0x501   : > { %v1462_v39 = vpop.f32.mrf.mxu1 }
 0x502   : > { %v937_v40 = vadd.f32 %v1462_v39, %v871_v37 }
 0x503   : > { %v928_v42 = vpop.f32.mrf.mxu1 }
 0x504   : > { %v929_v43 = vadd.f32 %v928_v42, %v861_v41  ;;  %v945_v45 = vmax.f32 %v937_v40, 0.0 }
 0x505   : > { %v1463_v44 = vpop.f32.mrf.mxu1 }
 0x506   : > { %v940_v46 = vadd.f32 %v1463_v44, %v876_v38  ;;  %v943_v49 = vmax.f32 %v929_v43, 0.0  ;;  %v949_v54 = vadd.f32 %v945_v45, %v1772_v52  ;;  %v1536_v52 = vld [vmem:[%s1849_s2 + $0x60] sm:$0xff]  }
 0x507   : > { %v931_v48 = vpop.f32.mrf.mxu1  ;;  %1476 = vmatprep.mubr.msk.bf16.mxu1 %vm487_vm1, %v1536_v52 }
 0x508   : > { %v946_v50 = vmax.f32 %v940_v46, 0.0  ;;  %v932_v51 = vadd.f32 %v931_v48, %v866_v47  ;;  %v947_v59 = vadd.f32 %v943_v49, %v1776_v55  ;;  %v979_v55 = vpop.permute.xlu1 %978 }
 0x50a   : > { %v950_v57 = vadd.f32 %v946_v50, %v1774_v53  ;;  %v944_v58 = vmax.f32 %v932_v51, 0.0  ;;  %v974_v53 = vpop.permute.xlu0 %973 }
 0x50c   : > { %v948_v60 = vadd.f32 %v944_v58, %v1778_v56  ;;  %v956_v61 = vpack.c.bf16 %v950_v57, %v949_v54  ;;  %v969_v5 = vpop.permute.xlu1 %968 }
 0x50e   : > { %1464 = vmatprep.subr.bf16.mxu0 %v956_v61  ;;  %v955_v62 = vpack.c.bf16 %v948_v60, %v947_v59  ;;  %v964_v2 = vpop.permute.xlu0 %963 }
 0x50f   : > { %1465 = vmatpush3.bf16.msra.mxu0 %v956_v61 }
 0x510   : > { %1466 = vmatprep.subr.bf16.mxu0 %v955_v62  ;;  %v1074_v14 = vpop.permute.xlu1 %1073 }
 0x512   : > { %v1069_v13 = vpop.permute.xlu0 %1068 }
 0x513   : > { %1467 = vmatpush3.bf16.msra.mxu0 %v955_v62 }
 0x514   : > { %v1064_v21 = vpop.permute.xlu1 %1063 }
 0x516   : > { %1469 = vmatmul.mubr.msk.bf16.vlgmr.msra.gmra.mxu0 %vm487_vm1, %v1535_v63  ;;  %v1059_v18 = vpop.permute.xlu0 %1058 }
 0x517   : > { %1484 = vmatprep.mubr.msk.bf16.mxu0 %vm487_vm1, %v1538_v12 }
 0x518   : > { %v1157_v35 = vpop.permute.xlu1 %1156 }
 0x51a   : > { %v1152_v28 = vpop.permute.xlu0 %1151 }
 0x51e   : > { %v1162_v29 = vpop.permute.xlu0 %1161 }
 0x5d6   : > { %v1470_v56 = vpop.f32.mrf.mxu0 }
 0x5d7   : > { %v1040_v3 = vadd.f32 %v1470_v56, %v974_v53 }
 0x5d8   : > { %v1031_v0 = vpop.f32.mrf.mxu0 }
 0x5d9   : > { %v1032_v7 = vadd.f32 %v1031_v0, %v964_v2 }
 0x5da   : > { %v1471_v1 = vpop.f32.mrf.mxu0 }
 0x5db   : > { %v1043_v4 = vadd.f32 %v1471_v1, %v979_v55 }
 0x5dc   : > { %v1034_v6 = vpop.f32.mrf.mxu0 }
 0x5dd   : > { %v1051_v8 = vpack.c.bf16 %v1043_v4, %v1040_v3  ;;  %v1035_v9 = vadd.f32 %v1034_v6, %v969_v5 }
 0x5df   : > { %v1050_v10 = vpack.c.bf16 %v1035_v9, %v1032_v7  ;;  %1472 = vmatprep.subr.bf16.mxu1 %v1051_v8 }
 0x5e0   : > { %1473 = vmatpush3.bf16.msra.mxu1 %v1051_v8 }
 0x5e1   : > { %1474 = vmatprep.subr.bf16.mxu1 %v1050_v10 }
 0x5e4   : > { %1475 = vmatpush3.bf16.msra.mxu1 %v1050_v10 }
 0x5e7   : > { %1477 = vmatmul.mubr.msk.bf16.vlgmr.msra.gmra.mxu1 %vm487_vm1, %v1537_v11 }
 0x6a7   : > { %v1478_v15 = vpop.f32.mrf.mxu1 }
 0x6a8   : > { %v1135_v19 = vadd.f32 %v1478_v15, %v1069_v13 }
 0x6a9   : > { %v1126_v16 = vpop.f32.mrf.mxu1 }
 0x6aa   : > { %v1127_v23 = vadd.f32 %v1126_v16, %v1059_v18 }
 0x6ab   : > { %v1479_v17 = vpop.f32.mrf.mxu1 }
 0x6ac   : > { %v1138_v20 = vadd.f32 %v1479_v17, %v1074_v14 }
 0x6ad   : > { %v1129_v22 = vpop.f32.mrf.mxu1 }
 0x6ae   : > { %v1145_v24 = vpack.c.bf16 %v1138_v20, %v1135_v19  ;;  %v1130_v25 = vadd.f32 %v1129_v22, %v1064_v21 }
 0x6b0   : > { %v1144_v26 = vpack.c.bf16 %v1130_v25, %v1127_v23  ;;  %1480 = vmatprep.subr.bf16.mxu0 %v1145_v24 }
 0x6b1   : > { %1481 = vmatpush3.bf16.msra.mxu0 %v1145_v24 }
 0x6b2   : > { %1482 = vmatprep.subr.bf16.mxu0 %v1144_v26 }
 0x6b5   : > { %1483 = vmatpush3.bf16.msra.mxu0 %v1144_v26 }
 0x6b8   : > { %1485 = vmatmul.mubr.msk.bf16.vlgmr.msra.gmra.mxu0 %vm487_vm1, %v1539_v27 }
 0x778   : > { %v1486_v30 = vpop.f32.mrf.mxu0 }
 0x779   : > { %v1221_v31 = vadd.f32 %v1486_v30, %v1162_v29 }
 0x77a   : > { %v1212_v32 = vpop.f32.mrf.mxu0 }
 0x77b   : > { %1229 = vst.msk [vmem:[%s255_s17 + $0x10] sm:$0xf] %vm1228_vm2, %v1221_v31  ;;  %v1213_v33 = vadd.f32 %v1212_v32, %v1152_v28 }
 0x77c   : > { %v1487_v34 = vpop.f32.mrf.mxu0 }
 0x77d   : > { %1226 = vst.msk [vmem:[%s255_s17] sm:$0xff] %vm365_vm0, %v1213_v33 }
 0x77e   : > { %v1215_v36 = vpop.f32.mrf.mxu0 }
 0x77f   : > { %v1216_v37 = vadd.f32 %v1215_v36, %v1157_v35 }
 0x781   : > { %1227 = vst.msk [vmem:[%s255_s17 + $0x8] sm:$0xff] %vm365_vm0, %v1216_v37 }
 0x782 PF: > { %s15_s20 = sadd.s32 1, %s1562_s20   ;;  %s1853_s18 = smov %s1558_s19 }
 0x783   : > { %p12_p5 = scmp.ge.s32.totalorder %s15_s20, 4   ;;  %s1854_s19 = smov %s1856_s21 }
 0x785   :  { %14 = sbr.rel (!%p12_p5) target bundleno = 2 (0x2), region = 70 }

</bundles_post_ra>
